<compile_context>
chip_gen: v6e
topology: v6e:2x2x1
jax: 0.10.0
libtpu: 0.0.40
codegen_flags: <defaults>
</compile_context>

<pallas_src>
import functools

import jax
import jax.numpy as jnp
from jax import lax
from jax.experimental import pallas as pl
from jax.experimental.pallas import tpu as pltpu

K = 3  # ConvTranspose2d kernel size (stride=1, padding=0)


# ---------------------------------------------------------------------------
# Fused decoder kernel (one grid step == one image)
# ---------------------------------------------------------------------------
def _decoder_kernel(taps1_ref, idx2_ref, idx1_ref,
                    w1_ref, w2_ref, w3_ref,
                    b1_ref, s1_ref, sh1_ref,
                    b2_ref, s2_ref, sh2_ref,
                    b3_ref,
                    cop2_ref, ext2_ref, cop3_ref,
                    o_ref,
                    pad2_ref, taps2_ref, pad3_ref, taps3_ref,
                    *, cmid, l1, l2, l3, n_in2, wp2, wp3, need2, need3):
    f32 = jnp.float32
    bf16 = jnp.bfloat16

    # ---- deconv1: single (Cmid, 9*Cin) x (9*Cin, L1) matmul + bias + ReLU + BN
    d1 = jnp.dot(w1_ref[...], taps1_ref[0].astype(bf16),
                 preferred_element_type=f32)                       # (Cmid, L1)
    d1 = jnp.maximum(d1 + b1_ref[...], 0.0) * s1_ref[...] + sh1_ref[...]
    # TODO(synk): Dropout2d -> eval-mode identity.

    # ---- unpool1: compare-scatter straight into the zero-padded flat layout
    #      that deconv2 consumes.  Accumulator lives in the fori_loop carry.
    idx2 = idx2_ref[0]                                             # (Cmid, L1) f32
    cop2 = jnp.broadcast_to(cop2_ref[...], (cmid, need2))          # padded-pos -> compact idx
    pos1 = lax.broadcasted_iota(jnp.int32, (1, l1), 1)

    def scatter1(i, acc):
        m = pos1 == i                                              # select input column i
        v = jnp.sum(jnp.where(m, d1, 0.0), axis=-1, keepdims=True)    # (Cmid, 1)
        ix = jnp.sum(jnp.where(m, idx2, 0.0), axis=-1, keepdims=True)  # target flat index
        return acc + jnp.where(cop2 == ix, v, 0.0)

    pad2_ref[...] = lax.fori_loop(0, l1, scatter1,
                                  jnp.zeros((cmid, need2), f32))

    # ---- deconv2: taps = 9 statically shifted windows of the padded-flat input
    for t in range(K * K):
        off = (t // K) * wp2 + (t % K)
        taps2_ref[t * cmid:(t + 1) * cmid, :] = pad2_ref[:, off:off + l2]
    d2 = jnp.dot(w2_ref[...], taps2_ref[...].astype(bf16),
                 preferred_element_type=f32)                       # (Cmid, L2) wide layout
    d2 = jnp.maximum(d2 + b2_ref[...], 0.0) * s2_ref[...] + sh2_ref[...]

    # ---- unpool2 (d2 is in the "wide" Wp2 row layout; ext2 maps wide -> compact)
    idx1 = idx1_ref[0]                                             # (Cmid, n_in2) f32
    cop3 = jnp.broadcast_to(cop3_ref[...], (cmid, need3))
    ext2 = ext2_ref[...]                                           # (1, L2) int32
    pos2 = lax.broadcasted_iota(jnp.int32, (1, n_in2), 1)

    def scatter2(i, acc):
        mv = ext2 == i                                             # value column (wide layout)
        mi = pos2 == i                                             # index column (compact)
        v = jnp.sum(jnp.where(mv, d2, 0.0), axis=-1, keepdims=True)
        ix = jnp.sum(jnp.where(mi, idx1, 0.0), axis=-1, keepdims=True)
        return acc + jnp.where(cop3 == ix, v, 0.0)

    pad3_ref[...] = lax.fori_loop(0, n_in2, scatter2,
                                  jnp.zeros((cmid, need3), f32))

    # ---- deconv3 (+ bias, no ReLU / BN)
    for t in range(K * K):
        off = (t // K) * wp3 + (t % K)
        taps3_ref[t * cmid:(t + 1) * cmid, :] = pad3_ref[:, off:off + l3]
    out = jnp.dot(w3_ref[...], taps3_ref[...].astype(bf16),
                  preferred_element_type=f32) + b3_ref[...]        # (Cout, L3) wide layout
    o_ref[0] = out.astype(o_ref.dtype)


# ---------------------------------------------------------------------------
# Host-side wrapper (NCHW in / NCHW out, like the PyTorch module)
# ---------------------------------------------------------------------------
def _flatten_weight(w):
    """PyTorch ConvTranspose2d weight (Cin, Cout, K, K) -> (Cout, K*K*Cin) bf16.

    ConvTranspose(stride=1, pad=0) == valid correlation of the spatially flipped
    kernel over the input zero-padded by K-1.  Row ordering is tap-major
    (t = p*K + q), channel-minor, matching the tap construction."""
    cin, cout = w.shape[0], w.shape[1]
    wf = jnp.transpose(w[:, :, ::-1, ::-1], (2, 3, 0, 1))          # (K, K, Cin, Cout)
    return wf.reshape(K * K * cin, cout).T.astype(jnp.bfloat16)


def cnn_decoder_forward(params, x_nchw, indices1, indices2, size1, size2):
    n, cin, h0, w0 = x_nchw.shape
    cmid = params["w1"].shape[1]
    cout = params["w3"].shape[1]

    hm1, wm1 = h0 + 2, w0 + 2            # deconv1 out  / unpool1 in
    hu1, wu1 = size2                     # unpool1 out
    hm2, wm2 = hu1 + 2, wu1 + 2          # deconv2 out  / unpool2 in
    hu2, wu2 = size1                     # unpool2 out
    hf, wf_ = hu2 + 2, wu2 + 2           # final output spatial

    assert indices2.shape == (n, cmid, hm1, wm1), indices2.shape
    assert indices1.shape == (n, cmid, hm2, wm2), indices1.shape

    l1 = hm1 * wm1
    wp2 = wu1 + 2 * (K - 1)              # padded row width for deconv2's input
    l2 = hm2 * wp2                       # deconv2 output length in the wide layout
    need2 = l2 + (K - 1) * wp2 + (K - 1)
    n_in2 = hm2 * wm2
    wp3 = wu2 + 2 * (K - 1)
    l3 = hf * wp3
    need3 = l3 + (K - 1) * wp3 + (K - 1)

    # im2col for the *first* deconv only (its input comes from HBM anyway):
    # (N, 9*Cin, L1), tap-major / channel-minor, spatial flattened on the lane axis.
    xp = jnp.pad(x_nchw, ((0, 0), (0, 0), (K - 1, K - 1), (K - 1, K - 1)))
    taps1 = jnp.concatenate(
        [xp[:, :, p:p + hm1, q:q + wm1].reshape(n, cin, l1)
         for p in range(K) for q in range(K)], axis=1)

    idx2f = indices2.reshape(n, cmid, l1).astype(jnp.float32)
    idx1f = indices1.reshape(n, cmid, n_in2).astype(jnp.float32)

    # constant index maps (padded-flat position -> compact flat index, or -1)
    def pad_to_compact(length, wpad, hvalid, wvalid):
        jp = jnp.arange(length)
        hh, ww = jp // wpad, jp % wpad
        ok = (hh >= K - 1) & (hh < K - 1 + hvalid) & (ww >= K - 1) & (ww < K - 1 + wvalid)
        return jnp.where(ok, (hh - (K - 1)) * wvalid + (ww - (K - 1)),
                         -1).astype(jnp.float32).reshape(1, length)

    cop2 = pad_to_compact(need2, wp2, hu1, wu1)
    cop3 = pad_to_compact(need3, wp3, hu2, wu2)
    jp = jnp.arange(l2)
    ext2 = jnp.where(jp % wp2 < wm2, (jp // wp2) * wm2 + (jp % wp2),
                     -1).astype(jnp.int32).reshape(1, l2)

    w1f = _flatten_weight(params["w1"])
    w2f = _flatten_weight(params["w2"])
    w3f = _flatten_weight(params["w3"])
    b1 = params["b1"].reshape(cmid, 1).astype(jnp.float32)
    b2 = params["b2"].reshape(cmid, 1).astype(jnp.float32)
    b3 = params["b3"].reshape(cout, 1).astype(jnp.float32)
    s1 = params["bn1_scale"].reshape(cmid, 1).astype(jnp.float32)
    sh1 = params["bn1_shift"].reshape(cmid, 1).astype(jnp.float32)
    s2 = params["bn2_scale"].reshape(cmid, 1).astype(jnp.float32)
    sh2 = params["bn2_shift"].reshape(cmid, 1).astype(jnp.float32)

    kernel = functools.partial(
        _decoder_kernel, cmid=cmid, l1=l1, l2=l2, l3=l3, n_in2=n_in2,
        wp2=wp2, wp3=wp3, need2=need2, need3=need3)

    def batch_spec(shape):
        return pl.BlockSpec((1,) + shape[1:],
                            lambda i: (i,) + (0,) * (len(shape) - 1))

    def const_spec(shape):
        return pl.BlockSpec(shape, lambda i: (0,) * len(shape))

    out_flat = pl.pallas_call(
        kernel,
        out_shape=jax.ShapeDtypeStruct((n, cout, l3), jnp.float32),
        grid=(n,),
        in_specs=[
            batch_spec((n, K * K * cin, l1)),
            batch_spec((n, cmid, l1)),
            batch_spec((n, cmid, n_in2)),
            const_spec((cmid, K * K * cin)),
            const_spec((cmid, K * K * cmid)),
            const_spec((cout, K * K * cmid)),
            const_spec((cmid, 1)), const_spec((cmid, 1)), const_spec((cmid, 1)),
            const_spec((cmid, 1)), const_spec((cmid, 1)), const_spec((cmid, 1)),
            const_spec((cout, 1)),
            const_spec((1, need2)),
            const_spec((1, l2)),
            const_spec((1, need3)),
        ],
        out_specs=batch_spec((n, cout, l3)),
        scratch_shapes=[
            pltpu.VMEM((cmid, need2), jnp.float32),
            pltpu.VMEM((K * K * cmid, l2), jnp.float32),
            pltpu.VMEM((cmid, need3), jnp.float32),
            pltpu.VMEM((K * K * cmid, l3), jnp.float32),
        ],
        compiler_params=pltpu.CompilerParams(dimension_semantics=("parallel",)),
    )(taps1, idx2f, idx1f, w1f, w2f, w3f,
      b1, s1, sh1, b2, s2, sh2, b3, cop2, ext2, cop3)

    # drop the (K-1) garbage columns of the wide row layout
    return out_flat.reshape(n, cout, hf, wp3)[:, :, :, :wf_]


# ---------------------------------------------------------------------------
# Pure-JAX (XLA) reference with the same bf16-operand / f32-accum matmul math
# ---------------------------------------------------------------------------
def _ref_deconv(x, w, b, scale, shift, relu):
    wf = jnp.transpose(w[:, :, ::-1, ::-1], (2, 3, 0, 1))          # (K,K,Cin,Cout)
    y = lax.conv_general_dilated(
        x.astype(jnp.bfloat16), wf.astype(jnp.bfloat16),
        window_strides=(1, 1), padding=((K - 1, K - 1), (K - 1, K - 1)),
        dimension_numbers=("NCHW", "HWIO", "NCHW"),
        preferred_element_type=jnp.float32)
    y = y + b[None, :, None, None]
    if relu:
        y = jnp.maximum(y, 0.0)
    if scale is not None:
        y = y * scale[None, :, None, None] + shift[None, :, None, None]
    return y


def _ref_unpool(x, idx, out_hw):
    n, c, h, w = x.shape
    ho, wo = out_hw
    out = jnp.zeros((n, c, ho * wo), x.dtype)
    out = out.at[jnp.arange(n)[:, None, None],
                 jnp.arange(c)[None, :, None],
                 idx.reshape(n, c, h * w)].set(x.reshape(n, c, h * w))
    return out.reshape(n, c, ho, wo)


if __name__ == "__main__":
    key = jax.random.PRNGKey(0)
    ks = jax.random.split(key, 16)

    N, IN_C, MID_C, OUT_C = 2, 16, 8, 3
    H0 = W0 = 4          # decoder input spatial
    H1 = H0 + 2          # deconv1 out -> 6 (= pooled size of size2)
    H2 = 13              # size2: unpool1 output spatial
    H3 = H2 + 2          # deconv2 out -> 15 (= pooled size of size1)
    H4 = 31              # size1: unpool2 output spatial ; final out = 33

    def kaiming(k, cin, cout):
        fan_in = cout * K * K
        return jax.random.normal(k, (cin, cout, K, K), jnp.float32) * jnp.sqrt(2.0 / fan_in)

    params = {
        "w1": kaiming(ks[0], IN_C, MID_C),
        "b1": 0.1 * jax.random.normal(ks[1], (MID_C,), jnp.float32),
        "w2": kaiming(ks[2], MID_C, MID_C),
        "b2": 0.1 * jax.random.normal(ks[3], (MID_C,), jnp.float32),
        "w3": kaiming(ks[4], MID_C, OUT_C),
        "b3": 0.1 * jax.random.normal(ks[5], (OUT_C,), jnp.float32),
    }
    eps = 1e-5
    for i, (kg, kb, km, kv) in enumerate(
        [(ks[6], ks[7], ks[8], ks[9]), (ks[10], ks[11], ks[12], ks[13])], start=1
    ):
        gamma = jax.random.uniform(kg, (MID_C,), jnp.float32, 0.5, 1.5)
        beta = 0.1 * jax.random.normal(kb, (MID_C,), jnp.float32)
        mean = 0.1 * jax.random.normal(km, (MID_C,), jnp.float32)
        var = jax.random.uniform(kv, (MID_C,), jnp.float32, 0.5, 1.5)
        scale = gamma / jnp.sqrt(var + eps)
        params[f"bn{i}_scale"] = scale
        params[f"bn{i}_shift"] = beta - mean * scale

    x = jax.random.normal(ks[14], (N, IN_C, H0, W0), jnp.float32)

    def window_center_indices(hp, wp, wfull, n, c):
        # valid MaxPool2d(k=3, s=2, return_indices=True) indices: window centers
        ii = jnp.arange(hp) * 2 + 1
        jj = jnp.arange(wp) * 2 + 1
        idx = ii[:, None] * wfull + jj[None, :]
        return jnp.broadcast_to(idx, (n, c, hp, wp)).astype(jnp.int32)

    indices2 = window_center_indices(H1, H1, H2, N, MID_C)  # consumed by unpool1
    indices1 = window_center_indices(H3, H3, H4, N, MID_C)  # consumed by unpool2
    size2 = (H2, H2)
    size1 = (H4, H4)

    fwd = jax.jit(cnn_decoder_forward, static_argnums=(4, 5))
    out = jax.block_until_ready(fwd(params, x, indices1, indices2, size1, size2))
    assert out.shape == (N, OUT_C, H4 + 2, H4 + 2), out.shape

    # reference (same bf16-operand / f32-accumulation matmul precision)
    r = _ref_deconv(x, params["w1"], params["b1"],
                    params["bn1_scale"], params["bn1_shift"], True)
    r = _ref_unpool(r, indices2, size2)
    r = _ref_deconv(r, params["w2"], params["b2"],
                    params["bn2_scale"], params["bn2_shift"], True)
    r = _ref_unpool(r, indices1, size1)
    ref = _ref_deconv(r, params["w3"], params["b3"], None, None, False)

    max_err = float(jnp.max(jnp.abs(out - ref)))
    mean_err = float(jnp.mean(jnp.abs(out - ref)))
    # tolerance covers bf16 rounding-boundary divergence between two bf16 pipelines
    assert jnp.allclose(out, ref, rtol=2e-2, atol=2e-2), (max_err, mean_err)
    assert mean_err < 1e-3, mean_err
    print("KERNEL_OK")
</pallas_src>

<mosaic_0001>
module attributes {stable_mosaic.version = 11 : i64} {
  func.func @_decoder_kernel(%arg0: i32, %arg1: memref<1x144x36xf32, #tpu.memory_space<vmem>>, %arg2: memref<1x8x36xf32, #tpu.memory_space<vmem>>, %arg3: memref<1x8x225xf32, #tpu.memory_space<vmem>>, %arg4: memref<8x144xbf16, #tpu.memory_space<vmem>>, %arg5: memref<8x72xbf16, #tpu.memory_space<vmem>>, %arg6: memref<3x72xbf16, #tpu.memory_space<vmem>>, %arg7: memref<8x1xf32, #tpu.memory_space<vmem>>, %arg8: memref<8x1xf32, #tpu.memory_space<vmem>>, %arg9: memref<8x1xf32, #tpu.memory_space<vmem>>, %arg10: memref<8x1xf32, #tpu.memory_space<vmem>>, %arg11: memref<8x1xf32, #tpu.memory_space<vmem>>, %arg12: memref<8x1xf32, #tpu.memory_space<vmem>>, %arg13: memref<3x1xf32, #tpu.memory_space<vmem>>, %arg14: memref<1x291xf32, #tpu.memory_space<vmem>>, %arg15: memref<1x255xi32, #tpu.memory_space<vmem>>, %arg16: memref<1x1227xf32, #tpu.memory_space<vmem>>, %arg17: memref<1x3x1155xf32, #tpu.memory_space<vmem>>, %arg18: memref<8x291xf32, #tpu.memory_space<vmem>>, %arg19: memref<72x255xf32, #tpu.memory_space<vmem>>, %arg20: memref<8x1227xf32, #tpu.memory_space<vmem>>, %arg21: memref<72x1155xf32, #tpu.memory_space<vmem>>) attributes {dimension_semantics = [#tpu.dimension_semantics<parallel>], iteration_bounds = array<i64: 2>, scalar_prefetch = 0 : i64, scratch_operands = 4 : i64, tpu.core_type = #tpu.core_type<tc>, window_params = [{transform_indices = @transform_0, window_bounds = array<i64: 1, 144, 36>}, {transform_indices = @transform_1, window_bounds = array<i64: 1, 8, 36>}, {transform_indices = @transform_2, window_bounds = array<i64: 1, 8, 225>}, {pipeline_mode = #tpu.pipeline_mode<synchronous>, transform_indices = @transform_3, window_bounds = array<i64: 8, 144>}, {pipeline_mode = #tpu.pipeline_mode<synchronous>, transform_indices = @transform_4, window_bounds = array<i64: 8, 72>}, {pipeline_mode = #tpu.pipeline_mode<synchronous>, transform_indices = @transform_5, window_bounds = array<i64: 3, 72>}, {pipeline_mode = #tpu.pipeline_mode<synchronous>, transform_indices = @transform_6, window_bounds = array<i64: 8, 1>}, {pipeline_mode = #tpu.pipeline_mode<synchronous>, transform_indices = @transform_7, window_bounds = array<i64: 8, 1>}, {pipeline_mode = #tpu.pipeline_mode<synchronous>, transform_indices = @transform_8, window_bounds = array<i64: 8, 1>}, {pipeline_mode = #tpu.pipeline_mode<synchronous>, transform_indices = @transform_9, window_bounds = array<i64: 8, 1>}, {pipeline_mode = #tpu.pipeline_mode<synchronous>, transform_indices = @transform_10, window_bounds = array<i64: 8, 1>}, {pipeline_mode = #tpu.pipeline_mode<synchronous>, transform_indices = @transform_11, window_bounds = array<i64: 8, 1>}, {pipeline_mode = #tpu.pipeline_mode<synchronous>, transform_indices = @transform_12, window_bounds = array<i64: 3, 1>}, {pipeline_mode = #tpu.pipeline_mode<synchronous>, transform_indices = @transform_13, window_bounds = array<i64: 1, 291>}, {pipeline_mode = #tpu.pipeline_mode<synchronous>, transform_indices = @transform_14, window_bounds = array<i64: 1, 255>}, {pipeline_mode = #tpu.pipeline_mode<synchronous>, transform_indices = @transform_15, window_bounds = array<i64: 1, 1227>}, {transform_indices = @transform_16, window_bounds = array<i64: 1, 3, 1155>}]} {
    %c0 = arith.constant 0 : index
    %c0_0 = arith.constant 0 : index
    %0 = vector.load %arg4[%c0, %c0_0] : memref<8x144xbf16, #tpu.memory_space<vmem>>, vector<8x144xbf16>
    %c0_1 = arith.constant 0 : index
    %c0_2 = arith.constant 0 : index
    %c0_3 = arith.constant 0 : index
    %1 = vector.load %arg1[%c0_1, %c0_2, %c0_3] : memref<1x144x36xf32, #tpu.memory_space<vmem>>, vector<1x144x36xf32>
    %2 = vector.shape_cast %1 : vector<1x144x36xf32> to vector<144x36xf32>
    %3 = arith.truncf %2 : vector<144x36xf32> to vector<144x36xbf16>
    %cst = arith.constant dense<0.000000e+00> : vector<8x36xf32>
    %4 = tpu.matmul %0, %3, %cst {dimension_numbers = #tpu.dot_dimension_numbers<[1], [0], [0], [1], [0, 0, 1, 1], [], []>} : vector<8x144xbf16>, vector<144x36xbf16>, vector<8x36xf32> -> vector<8x36xf32>
    %c0_4 = arith.constant 0 : index
    %c0_5 = arith.constant 0 : index
    %5 = vector.load %arg7[%c0_4, %c0_5] : memref<8x1xf32, #tpu.memory_space<vmem>>, vector<8x1xf32>
    %6 = vector.broadcast %5 : vector<8x1xf32> to vector<8x36xf32>
    %7 = arith.addf %4, %6 : vector<8x36xf32>
    %cst_6 = arith.constant 0.000000e+00 : f32
    %8 = vector.broadcast %cst_6 : f32 to vector<8x36xf32>
    %9 = arith.maximumf %7, %8 : vector<8x36xf32>
    %c0_7 = arith.constant 0 : index
    %c0_8 = arith.constant 0 : index
    %10 = vector.load %arg8[%c0_7, %c0_8] : memref<8x1xf32, #tpu.memory_space<vmem>>, vector<8x1xf32>
    %11 = vector.broadcast %10 : vector<8x1xf32> to vector<8x36xf32>
    %12 = arith.mulf %9, %11 : vector<8x36xf32>
    %c0_9 = arith.constant 0 : index
    %c0_10 = arith.constant 0 : index
    %13 = vector.load %arg9[%c0_9, %c0_10] : memref<8x1xf32, #tpu.memory_space<vmem>>, vector<8x1xf32>
    %14 = vector.broadcast %13 : vector<8x1xf32> to vector<8x36xf32>
    %15 = arith.addf %12, %14 : vector<8x36xf32>
    %c0_11 = arith.constant 0 : index
    %c0_12 = arith.constant 0 : index
    %c0_13 = arith.constant 0 : index
    %16 = vector.load %arg2[%c0_11, %c0_12, %c0_13] : memref<1x8x36xf32, #tpu.memory_space<vmem>>, vector<1x8x36xf32>
    %17 = vector.shape_cast %16 : vector<1x8x36xf32> to vector<8x36xf32>
    %c0_14 = arith.constant 0 : index
    %c0_15 = arith.constant 0 : index
    %18 = vector.load %arg14[%c0_14, %c0_15] : memref<1x291xf32, #tpu.memory_space<vmem>>, vector<1x291xf32>
    %19 = vector.shape_cast %18 : vector<1x291xf32> to vector<1x291xf32>
    %20 = vector.broadcast %19 : vector<1x291xf32> to vector<8x291xf32>
    %21 = tpu.iota {dimensions = array<i32: 1>} : vector<1x36xi32>
    %cst_16 = arith.constant 0.000000e+00 : f32
    %22 = vector.broadcast %cst_16 : f32 to vector<8x291xf32>
    %c0_i32 = arith.constant 0 : i32
    %c36_i32 = arith.constant 36 : i32
    %23 = arith.addi %c0_i32, %c36_i32 : i32
    %c1_i32 = arith.constant 1 : i32
    %24 = scf.for %arg22 = %c0_i32 to %23 step %c1_i32 iter_args(%arg23 = %22) -> (vector<8x291xf32>)  : i32 {
      %98 = vector.broadcast %arg22 : i32 to vector<1x36xi32>
      %99 = arith.cmpi eq, %21, %98 : vector<1x36xi32>
      %cst_107 = arith.constant 0.000000e+00 : f32
      %100 = vector.shape_cast %99 : vector<1x36xi1> to vector<1x36xi1>
      %101 = vector.broadcast %100 : vector<1x36xi1> to vector<8x36xi1>
      %102 = vector.broadcast %cst_107 : f32 to vector<8x36xf32>
      %103 = arith.select %101, %15, %102 : vector<8x36xi1>, vector<8x36xf32>
      %cst_108 = arith.constant dense<0.000000e+00> : vector<8xf32>
      %104 = vector.multi_reduction <add>, %103, %cst_108 [1] : vector<8x36xf32> to vector<8xf32>
      %105 = vector.shape_cast %104 : vector<8xf32> to vector<8x1xf32>
      %cst_109 = arith.constant 0.000000e+00 : f32
      %106 = vector.shape_cast %99 : vector<1x36xi1> to vector<1x36xi1>
      %107 = vector.broadcast %106 : vector<1x36xi1> to vector<8x36xi1>
      %108 = vector.broadcast %cst_109 : f32 to vector<8x36xf32>
      %109 = arith.select %107, %17, %108 : vector<8x36xi1>, vector<8x36xf32>
      %cst_110 = arith.constant dense<0.000000e+00> : vector<8xf32>
      %110 = vector.multi_reduction <add>, %109, %cst_110 [1] : vector<8x36xf32> to vector<8xf32>
      %111 = vector.shape_cast %110 : vector<8xf32> to vector<8x1xf32>
      %112 = vector.broadcast %111 : vector<8x1xf32> to vector<8x291xf32>
      %113 = arith.cmpf oeq, %20, %112 : vector<8x291xf32>
      %cst_111 = arith.constant 0.000000e+00 : f32
      %114 = vector.shape_cast %105 : vector<8x1xf32> to vector<8x1xf32>
      %115 = vector.broadcast %114 : vector<8x1xf32> to vector<8x291xf32>
      %116 = vector.broadcast %cst_111 : f32 to vector<8x291xf32>
      %117 = arith.select %113, %115, %116 : vector<8x291xi1>, vector<8x291xf32>
      %118 = arith.addf %arg23, %117 : vector<8x291xf32>
      scf.yield %118 : vector<8x291xf32>
    }
    %c36_i32_17 = arith.constant 36 : i32
    %c0_18 = arith.constant 0 : index
    %c0_19 = arith.constant 0 : index
    %25 = vector.load %arg18[%c0_18, %c0_19] : memref<8x291xf32, #tpu.memory_space<vmem>>, vector<8x291xf32>
    tpu.vector_store %arg18[%c0_18, %c0_19], %24 {strides = array<i32>} : memref<8x291xf32, #tpu.memory_space<vmem>>, vector<8x291xf32>,
    %c0_20 = arith.constant 0 : index
    %c0_21 = arith.constant 0 : index
    %26 = vector.load %arg18[%c0_20, %c0_21] : memref<8x291xf32, #tpu.memory_space<vmem>>, vector<8x255xf32>
    %c0_22 = arith.constant 0 : index
    %c0_23 = arith.constant 0 : index
    %27 = vector.load %arg19[%c0_22, %c0_23] : memref<72x255xf32, #tpu.memory_space<vmem>>, vector<8x255xf32>
    tpu.vector_store %arg19[%c0_22, %c0_23], %26 {strides = array<i32>} : memref<72x255xf32, #tpu.memory_space<vmem>>, vector<8x255xf32>,
    %c0_24 = arith.constant 0 : index
    %c1 = arith.constant 1 : index
    %28 = vector.load %arg18[%c0_24, %c1] : memref<8x291xf32, #tpu.memory_space<vmem>>, vector<8x255xf32>
    %c8 = arith.constant 8 : index
    %c0_25 = arith.constant 0 : index
    %29 = vector.load %arg19[%c8, %c0_25] : memref<72x255xf32, #tpu.memory_space<vmem>>, vector<8x255xf32>
    tpu.vector_store %arg19[%c8, %c0_25], %28 {strides = array<i32>} : memref<72x255xf32, #tpu.memory_space<vmem>>, vector<8x255xf32>,
    %c0_26 = arith.constant 0 : index
    %c2 = arith.constant 2 : index
    %30 = vector.load %arg18[%c0_26, %c2] : memref<8x291xf32, #tpu.memory_space<vmem>>, vector<8x255xf32>
    %c16 = arith.constant 16 : index
    %c0_27 = arith.constant 0 : index
    %31 = vector.load %arg19[%c16, %c0_27] : memref<72x255xf32, #tpu.memory_space<vmem>>, vector<8x255xf32>
    tpu.vector_store %arg19[%c16, %c0_27], %30 {strides = array<i32>} : memref<72x255xf32, #tpu.memory_space<vmem>>, vector<8x255xf32>,
    %c0_28 = arith.constant 0 : index
    %c17 = arith.constant 17 : index
    %32 = vector.load %arg18[%c0_28, %c17] : memref<8x291xf32, #tpu.memory_space<vmem>>, vector<8x255xf32>
    %c24 = arith.constant 24 : index
    %c0_29 = arith.constant 0 : index
    %33 = vector.load %arg19[%c24, %c0_29] : memref<72x255xf32, #tpu.memory_space<vmem>>, vector<8x255xf32>
    tpu.vector_store %arg19[%c24, %c0_29], %32 {strides = array<i32>} : memref<72x255xf32, #tpu.memory_space<vmem>>, vector<8x255xf32>,
    %c0_30 = arith.constant 0 : index
    %c18 = arith.constant 18 : index
    %34 = vector.load %arg18[%c0_30, %c18] : memref<8x291xf32, #tpu.memory_space<vmem>>, vector<8x255xf32>
    %c32 = arith.constant 32 : index
    %c0_31 = arith.constant 0 : index
    %35 = vector.load %arg19[%c32, %c0_31] : memref<72x255xf32, #tpu.memory_space<vmem>>, vector<8x255xf32>
    tpu.vector_store %arg19[%c32, %c0_31], %34 {strides = array<i32>} : memref<72x255xf32, #tpu.memory_space<vmem>>, vector<8x255xf32>,
    %c0_32 = arith.constant 0 : index
    %c19 = arith.constant 19 : index
    %36 = vector.load %arg18[%c0_32, %c19] : memref<8x291xf32, #tpu.memory_space<vmem>>, vector<8x255xf32>
    %c40 = arith.constant 40 : index
    %c0_33 = arith.constant 0 : index
    %37 = vector.load %arg19[%c40, %c0_33] : memref<72x255xf32, #tpu.memory_space<vmem>>, vector<8x255xf32>
    tpu.vector_store %arg19[%c40, %c0_33], %36 {strides = array<i32>} : memref<72x255xf32, #tpu.memory_space<vmem>>, vector<8x255xf32>,
    %c0_34 = arith.constant 0 : index
    %c34 = arith.constant 34 : index
    %38 = vector.load %arg18[%c0_34, %c34] : memref<8x291xf32, #tpu.memory_space<vmem>>, vector<8x255xf32>
    %c48 = arith.constant 48 : index
    %c0_35 = arith.constant 0 : index
    %39 = vector.load %arg19[%c48, %c0_35] : memref<72x255xf32, #tpu.memory_space<vmem>>, vector<8x255xf32>
    tpu.vector_store %arg19[%c48, %c0_35], %38 {strides = array<i32>} : memref<72x255xf32, #tpu.memory_space<vmem>>, vector<8x255xf32>,
    %c0_36 = arith.constant 0 : index
    %c35 = arith.constant 35 : index
    %40 = vector.load %arg18[%c0_36, %c35] : memref<8x291xf32, #tpu.memory_space<vmem>>, vector<8x255xf32>
    %c56 = arith.constant 56 : index
    %c0_37 = arith.constant 0 : index
    %41 = vector.load %arg19[%c56, %c0_37] : memref<72x255xf32, #tpu.memory_space<vmem>>, vector<8x255xf32>
    tpu.vector_store %arg19[%c56, %c0_37], %40 {strides = array<i32>} : memref<72x255xf32, #tpu.memory_space<vmem>>, vector<8x255xf32>,
    %c0_38 = arith.constant 0 : index
    %c36 = arith.constant 36 : index
    %42 = vector.load %arg18[%c0_38, %c36] : memref<8x291xf32, #tpu.memory_space<vmem>>, vector<8x255xf32>
    %c64 = arith.constant 64 : index
    %c0_39 = arith.constant 0 : index
    %43 = vector.load %arg19[%c64, %c0_39] : memref<72x255xf32, #tpu.memory_space<vmem>>, vector<8x255xf32>
    tpu.vector_store %arg19[%c64, %c0_39], %42 {strides = array<i32>} : memref<72x255xf32, #tpu.memory_space<vmem>>, vector<8x255xf32>,
    %c0_40 = arith.constant 0 : index
    %c0_41 = arith.constant 0 : index
    %44 = vector.load %arg5[%c0_40, %c0_41] : memref<8x72xbf16, #tpu.memory_space<vmem>>, vector<8x72xbf16>
    %c0_42 = arith.constant 0 : index
    %c0_43 = arith.constant 0 : index
    %45 = vector.load %arg19[%c0_42, %c0_43] : memref<72x255xf32, #tpu.memory_space<vmem>>, vector<72x255xf32>
    %46 = arith.truncf %45 : vector<72x255xf32> to vector<72x255xbf16>
    %cst_44 = arith.constant dense<0.000000e+00> : vector<8x255xf32>
    %47 = tpu.matmul %44, %46, %cst_44 {dimension_numbers = #tpu.dot_dimension_numbers<[1], [0], [0], [1], [0, 0, 1, 1], [], []>} : vector<8x72xbf16>, vector<72x255xbf16>, vector<8x255xf32> -> vector<8x255xf32>
    %c0_45 = arith.constant 0 : index
    %c0_46 = arith.constant 0 : index
    %48 = vector.load %arg10[%c0_45, %c0_46] : memref<8x1xf32, #tpu.memory_space<vmem>>, vector<8x1xf32>
    %49 = vector.broadcast %48 : vector<8x1xf32> to vector<8x255xf32>
    %50 = arith.addf %47, %49 : vector<8x255xf32>
    %cst_47 = arith.constant 0.000000e+00 : f32
    %51 = vector.broadcast %cst_47 : f32 to vector<8x255xf32>
    %52 = arith.maximumf %50, %51 : vector<8x255xf32>
    %c0_48 = arith.constant 0 : index
    %c0_49 = arith.constant 0 : index
    %53 = vector.load %arg11[%c0_48, %c0_49] : memref<8x1xf32, #tpu.memory_space<vmem>>, vector<8x1xf32>
    %54 = vector.broadcast %53 : vector<8x1xf32> to vector<8x255xf32>
    %55 = arith.mulf %52, %54 : vector<8x255xf32>
    %c0_50 = arith.constant 0 : index
    %c0_51 = arith.constant 0 : index
    %56 = vector.load %arg12[%c0_50, %c0_51] : memref<8x1xf32, #tpu.memory_space<vmem>>, vector<8x1xf32>
    %57 = vector.broadcast %56 : vector<8x1xf32> to vector<8x255xf32>
    %58 = arith.addf %55, %57 : vector<8x255xf32>
    %c0_52 = arith.constant 0 : index
    %c0_53 = arith.constant 0 : index
    %c0_54 = arith.constant 0 : index
    %59 = vector.load %arg3[%c0_52, %c0_53, %c0_54] : memref<1x8x225xf32, #tpu.memory_space<vmem>>, vector<1x8x225xf32>
    %60 = vector.shape_cast %59 : vector<1x8x225xf32> to vector<8x225xf32>
    %c0_55 = arith.constant 0 : index
    %c0_56 = arith.constant 0 : index
    %61 = vector.load %arg16[%c0_55, %c0_56] : memref<1x1227xf32, #tpu.memory_space<vmem>>, vector<1x1227xf32>
    %62 = vector.shape_cast %61 : vector<1x1227xf32> to vector<1x1227xf32>
    %63 = vector.broadcast %62 : vector<1x1227xf32> to vector<8x1227xf32>
    %c0_57 = arith.constant 0 : index
    %c0_58 = arith.constant 0 : index
    %64 = vector.load %arg15[%c0_57, %c0_58] : memref<1x255xi32, #tpu.memory_space<vmem>>, vector<1x255xi32>
    %65 = tpu.iota {dimensions = array<i32: 1>} : vector<1x225xi32>
    %cst_59 = arith.constant 0.000000e+00 : f32
    %66 = vector.broadcast %cst_59 : f32 to vector<8x1227xf32>
    %c0_i32_60 = arith.constant 0 : i32
    %c225_i32 = arith.constant 225 : i32
    %67 = arith.addi %c0_i32_60, %c225_i32 : i32
    %c1_i32_61 = arith.constant 1 : i32
    %68 = scf.for %arg22 = %c0_i32_60 to %67 step %c1_i32_61 iter_args(%arg23 = %66) -> (vector<8x1227xf32>)  : i32 {
      %98 = vector.broadcast %arg22 : i32 to vector<1x255xi32>
      %99 = arith.cmpi eq, %64, %98 : vector<1x255xi32>
      %100 = vector.broadcast %arg22 : i32 to vector<1x225xi32>
      %101 = arith.cmpi eq, %65, %100 : vector<1x225xi32>
      %cst_107 = arith.constant 0.000000e+00 : f32
      %102 = vector.shape_cast %99 : vector<1x255xi1> to vector<1x255xi1>
      %103 = vector.broadcast %102 : vector<1x255xi1> to vector<8x255xi1>
      %104 = vector.broadcast %cst_107 : f32 to vector<8x255xf32>
      %105 = arith.select %103, %58, %104 : vector<8x255xi1>, vector<8x255xf32>
      %cst_108 = arith.constant dense<0.000000e+00> : vector<8xf32>
      %106 = vector.multi_reduction <add>, %105, %cst_108 [1] : vector<8x255xf32> to vector<8xf32>
      %107 = vector.shape_cast %106 : vector<8xf32> to vector<8x1xf32>
      %cst_109 = arith.constant 0.000000e+00 : f32
      %108 = vector.shape_cast %101 : vector<1x225xi1> to vector<1x225xi1>
      %109 = vector.broadcast %108 : vector<1x225xi1> to vector<8x225xi1>
      %110 = vector.broadcast %cst_109 : f32 to vector<8x225xf32>
      %111 = arith.select %109, %60, %110 : vector<8x225xi1>, vector<8x225xf32>
      %cst_110 = arith.constant dense<0.000000e+00> : vector<8xf32>
      %112 = vector.multi_reduction <add>, %111, %cst_110 [1] : vector<8x225xf32> to vector<8xf32>
      %113 = vector.shape_cast %112 : vector<8xf32> to vector<8x1xf32>
      %114 = vector.broadcast %113 : vector<8x1xf32> to vector<8x1227xf32>
      %115 = arith.cmpf oeq, %63, %114 : vector<8x1227xf32>
      %cst_111 = arith.constant 0.000000e+00 : f32
      %116 = vector.shape_cast %107 : vector<8x1xf32> to vector<8x1xf32>
      %117 = vector.broadcast %116 : vector<8x1xf32> to vector<8x1227xf32>
      %118 = vector.broadcast %cst_111 : f32 to vector<8x1227xf32>
      %119 = arith.select %115, %117, %118 : vector<8x1227xi1>, vector<8x1227xf32>
      %120 = arith.addf %arg23, %119 : vector<8x1227xf32>
      scf.yield %120 : vector<8x1227xf32>
    }
    %c225_i32_62 = arith.constant 225 : i32
    %c0_63 = arith.constant 0 : index
    %c0_64 = arith.constant 0 : index
    %69 = vector.load %arg20[%c0_63, %c0_64] : memref<8x1227xf32, #tpu.memory_space<vmem>>, vector<8x1227xf32>
    tpu.vector_store %arg20[%c0_63, %c0_64], %68 {strides = array<i32>} : memref<8x1227xf32, #tpu.memory_space<vmem>>, vector<8x1227xf32>,
    %c0_65 = arith.constant 0 : index
    %c0_66 = arith.constant 0 : index
    %70 = vector.load %arg20[%c0_65, %c0_66] : memref<8x1227xf32, #tpu.memory_space<vmem>>, vector<8x1155xf32>
    %c0_67 = arith.constant 0 : index
    %c0_68 = arith.constant 0 : index
    %71 = vector.load %arg21[%c0_67, %c0_68] : memref<72x1155xf32, #tpu.memory_space<vmem>>, vector<8x1155xf32>
    tpu.vector_store %arg21[%c0_67, %c0_68], %70 {strides = array<i32>} : memref<72x1155xf32, #tpu.memory_space<vmem>>, vector<8x1155xf32>,
    %c0_69 = arith.constant 0 : index
    %c1_70 = arith.constant 1 : index
    %72 = vector.load %arg20[%c0_69, %c1_70] : memref<8x1227xf32, #tpu.memory_space<vmem>>, vector<8x1155xf32>
    %c8_71 = arith.constant 8 : index
    %c0_72 = arith.constant 0 : index
    %73 = vector.load %arg21[%c8_71, %c0_72] : memref<72x1155xf32, #tpu.memory_space<vmem>>, vector<8x1155xf32>
    tpu.vector_store %arg21[%c8_71, %c0_72], %72 {strides = array<i32>} : memref<72x1155xf32, #tpu.memory_space<vmem>>, vector<8x1155xf32>,
    %c0_73 = arith.constant 0 : index
    %c2_74 = arith.constant 2 : index
    %74 = vector.load %arg20[%c0_73, %c2_74] : memref<8x1227xf32, #tpu.memory_space<vmem>>, vector<8x1155xf32>
    %c16_75 = arith.constant 16 : index
    %c0_76 = arith.constant 0 : index
    %75 = vector.load %arg21[%c16_75, %c0_76] : memref<72x1155xf32, #tpu.memory_space<vmem>>, vector<8x1155xf32>
    tpu.vector_store %arg21[%c16_75, %c0_76], %74 {strides = array<i32>} : memref<72x1155xf32, #tpu.memory_space<vmem>>, vector<8x1155xf32>,
    %c0_77 = arith.constant 0 : index
    %c35_78 = arith.constant 35 : index
    %76 = vector.load %arg20[%c0_77, %c35_78] : memref<8x1227xf32, #tpu.memory_space<vmem>>, vector<8x1155xf32>
    %c24_79 = arith.constant 24 : index
    %c0_80 = arith.constant 0 : index
    %77 = vector.load %arg21[%c24_79, %c0_80] : memref<72x1155xf32, #tpu.memory_space<vmem>>, vector<8x1155xf32>
    tpu.vector_store %arg21[%c24_79, %c0_80], %76 {strides = array<i32>} : memref<72x1155xf32, #tpu.memory_space<vmem>>, vector<8x1155xf32>,
    %c0_81 = arith.constant 0 : index
    %c36_82 = arith.constant 36 : index
    %78 = vector.load %arg20[%c0_81, %c36_82] : memref<8x1227xf32, #tpu.memory_space<vmem>>, vector<8x1155xf32>
    %c32_83 = arith.constant 32 : index
    %c0_84 = arith.constant 0 : index
    %79 = vector.load %arg21[%c32_83, %c0_84] : memref<72x1155xf32, #tpu.memory_space<vmem>>, vector<8x1155xf32>
    tpu.vector_store %arg21[%c32_83, %c0_84], %78 {strides = array<i32>} : memref<72x1155xf32, #tpu.memory_space<vmem>>, vector<8x1155xf32>,
    %c0_85 = arith.constant 0 : index
    %c37 = arith.constant 37 : index
    %80 = vector.load %arg20[%c0_85, %c37] : memref<8x1227xf32, #tpu.memory_space<vmem>>, vector<8x1155xf32>
    %c40_86 = arith.constant 40 : index
    %c0_87 = arith.constant 0 : index
    %81 = vector.load %arg21[%c40_86, %c0_87] : memref<72x1155xf32, #tpu.memory_space<vmem>>, vector<8x1155xf32>
    tpu.vector_store %arg21[%c40_86, %c0_87], %80 {strides = array<i32>} : memref<72x1155xf32, #tpu.memory_space<vmem>>, vector<8x1155xf32>,
    %c0_88 = arith.constant 0 : index
    %c70 = arith.constant 70 : index
    %82 = vector.load %arg20[%c0_88, %c70] : memref<8x1227xf32, #tpu.memory_space<vmem>>, vector<8x1155xf32>
    %c48_89 = arith.constant 48 : index
    %c0_90 = arith.constant 0 : index
    %83 = vector.load %arg21[%c48_89, %c0_90] : memref<72x1155xf32, #tpu.memory_space<vmem>>, vector<8x1155xf32>
    tpu.vector_store %arg21[%c48_89, %c0_90], %82 {strides = array<i32>} : memref<72x1155xf32, #tpu.memory_space<vmem>>, vector<8x1155xf32>,
    %c0_91 = arith.constant 0 : index
    %c71 = arith.constant 71 : index
    %84 = vector.load %arg20[%c0_91, %c71] : memref<8x1227xf32, #tpu.memory_space<vmem>>, vector<8x1155xf32>
    %c56_92 = arith.constant 56 : index
    %c0_93 = arith.constant 0 : index
    %85 = vector.load %arg21[%c56_92, %c0_93] : memref<72x1155xf32, #tpu.memory_space<vmem>>, vector<8x1155xf32>
    tpu.vector_store %arg21[%c56_92, %c0_93], %84 {strides = array<i32>} : memref<72x1155xf32, #tpu.memory_space<vmem>>, vector<8x1155xf32>,
    %c0_94 = arith.constant 0 : index
    %c72 = arith.constant 72 : index
    %86 = vector.load %arg20[%c0_94, %c72] : memref<8x1227xf32, #tpu.memory_space<vmem>>, vector<8x1155xf32>
    %c64_95 = arith.constant 64 : index
    %c0_96 = arith.constant 0 : index
    %87 = vector.load %arg21[%c64_95, %c0_96] : memref<72x1155xf32, #tpu.memory_space<vmem>>, vector<8x1155xf32>
    tpu.vector_store %arg21[%c64_95, %c0_96], %86 {strides = array<i32>} : memref<72x1155xf32, #tpu.memory_space<vmem>>, vector<8x1155xf32>,
    %c0_97 = arith.constant 0 : index
    %c0_98 = arith.constant 0 : index
    %88 = vector.load %arg6[%c0_97, %c0_98] : memref<3x72xbf16, #tpu.memory_space<vmem>>, vector<3x72xbf16>
    %c0_99 = arith.constant 0 : index
    %c0_100 = arith.constant 0 : index
    %89 = vector.load %arg21[%c0_99, %c0_100] : memref<72x1155xf32, #tpu.memory_space<vmem>>, vector<72x1155xf32>
    %90 = arith.truncf %89 : vector<72x1155xf32> to vector<72x1155xbf16>
    %cst_101 = arith.constant dense<0.000000e+00> : vector<3x1155xf32>
    %91 = tpu.matmul %88, %90, %cst_101 {dimension_numbers = #tpu.dot_dimension_numbers<[1], [0], [0], [1], [0, 0, 1, 1], [], []>} : vector<3x72xbf16>, vector<72x1155xbf16>, vector<3x1155xf32> -> vector<3x1155xf32>
    %c0_102 = arith.constant 0 : index
    %c0_103 = arith.constant 0 : index
    %92 = vector.load %arg13[%c0_102, %c0_103] : memref<3x1xf32, #tpu.memory_space<vmem>>, vector<3x1xf32>
    %93 = vector.broadcast %92 : vector<3x1xf32> to vector<3x1155xf32>
    %94 = arith.addf %91, %93 : vector<3x1155xf32>
    %c0_104 = arith.constant 0 : index
    %c0_105 = arith.constant 0 : index
    %c0_106 = arith.constant 0 : index
    %95 = vector.load %arg17[%c0_104, %c0_105, %c0_106] : memref<1x3x1155xf32, #tpu.memory_space<vmem>>, vector<1x3x1155xf32>
    %96 = vector.shape_cast %95 : vector<1x3x1155xf32> to vector<3x1155xf32>
    %97 = vector.shape_cast %94 : vector<3x1155xf32> to vector<1x3x1155xf32>
    tpu.vector_store %arg17[%c0_104, %c0_105, %c0_106], %97 {strides = array<i32>} : memref<1x3x1155xf32, #tpu.memory_space<vmem>>, vector<1x3x1155xf32>,
    return
  }
  func.func @transform_0(%arg0: i32) -> (i32, i32, i32) {
    %c0_i32 = arith.constant 0 : i32
    %c0_i32_0 = arith.constant 0 : i32
    %c0_i32_1 = arith.constant 0 : i32
    return %arg0, %c0_i32, %c0_i32_0 : i32, i32, i32
  }
  func.func @transform_1(%arg0: i32) -> (i32, i32, i32) {
    %c0_i32 = arith.constant 0 : i32
    %c0_i32_0 = arith.constant 0 : i32
    %c0_i32_1 = arith.constant 0 : i32
    return %arg0, %c0_i32, %c0_i32_0 : i32, i32, i32
  }
  func.func @transform_2(%arg0: i32) -> (i32, i32, i32) {
    %c0_i32 = arith.constant 0 : i32
    %c0_i32_0 = arith.constant 0 : i32
    %c0_i32_1 = arith.constant 0 : i32
    return %arg0, %c0_i32, %c0_i32_0 : i32, i32, i32
  }
  func.func @transform_3(%arg0: i32) -> (i32, i32) {
    %c0_i32 = arith.constant 0 : i32
    %c0_i32_0 = arith.constant 0 : i32
    %c0_i32_1 = arith.constant 0 : i32
    return %c0_i32, %c0_i32_0 : i32, i32
  }
  func.func @transform_4(%arg0: i32) -> (i32, i32) {
    %c0_i32 = arith.constant 0 : i32
    %c0_i32_0 = arith.constant 0 : i32
    %c0_i32_1 = arith.constant 0 : i32
    return %c0_i32, %c0_i32_0 : i32, i32
  }
  func.func @transform_5(%arg0: i32) -> (i32, i32) {
    %c0_i32 = arith.constant 0 : i32
    %c0_i32_0 = arith.constant 0 : i32
    %c0_i32_1 = arith.constant 0 : i32
    return %c0_i32, %c0_i32_0 : i32, i32
  }
  func.func @transform_6(%arg0: i32) -> (i32, i32) {
    %c0_i32 = arith.constant 0 : i32
    %c0_i32_0 = arith.constant 0 : i32
    %c0_i32_1 = arith.constant 0 : i32
    return %c0_i32, %c0_i32_0 : i32, i32
  }
  func.func @transform_7(%arg0: i32) -> (i32, i32) {
    %c0_i32 = arith.constant 0 : i32
    %c0_i32_0 = arith.constant 0 : i32
    %c0_i32_1 = arith.constant 0 : i32
    return %c0_i32, %c0_i32_0 : i32, i32
  }
  func.func @transform_8(%arg0: i32) -> (i32, i32) {
    %c0_i32 = arith.constant 0 : i32
    %c0_i32_0 = arith.constant 0 : i32
    %c0_i32_1 = arith.constant 0 : i32
    return %c0_i32, %c0_i32_0 : i32, i32
  }
  func.func @transform_9(%arg0: i32) -> (i32, i32) {
    %c0_i32 = arith.constant 0 : i32
    %c0_i32_0 = arith.constant 0 : i32
    %c0_i32_1 = arith.constant 0 : i32
    return %c0_i32, %c0_i32_0 : i32, i32
  }
  func.func @transform_10(%arg0: i32) -> (i32, i32) {
    %c0_i32 = arith.constant 0 : i32
    %c0_i32_0 = arith.constant 0 : i32
    %c0_i32_1 = arith.constant 0 : i32
    return %c0_i32, %c0_i32_0 : i32, i32
  }
  func.func @transform_11(%arg0: i32) -> (i32, i32) {
    %c0_i32 = arith.constant 0 : i32
    %c0_i32_0 = arith.constant 0 : i32
    %c0_i32_1 = arith.constant 0 : i32
    return %c0_i32, %c0_i32_0 : i32, i32
  }
  func.func @transform_12(%arg0: i32) -> (i32, i32) {
    %c0_i32 = arith.constant 0 : i32
    %c0_i32_0 = arith.constant 0 : i32
    %c0_i32_1 = arith.constant 0 : i32
    return %c0_i32, %c0_i32_0 : i32, i32
  }
  func.func @transform_13(%arg0: i32) -> (i32, i32) {
    %c0_i32 = arith.constant 0 : i32
    %c0_i32_0 = arith.constant 0 : i32
    %c0_i32_1 = arith.constant 0 : i32
    return %c0_i32, %c0_i32_0 : i32, i32
  }
  func.func @transform_14(%arg0: i32) -> (i32, i32) {
    %c0_i32 = arith.constant 0 : i32
    %c0_i32_0 = arith.constant 0 : i32
    %c0_i32_1 = arith.constant 0 : i32
    return %c0_i32, %c0_i32_0 : i32, i32
  }
  func.func @transform_15(%arg0: i32) -> (i32, i32) {
    %c0_i32 = arith.constant 0 : i32
    %c0_i32_0 = arith.constant 0 : i32
    %c0_i32_1 = arith.constant 0 : i32
    return %c0_i32, %c0_i32_0 : i32, i32
  }
  func.func @transform_16(%arg0: i32) -> (i32, i32, i32) {
    %c0_i32 = arith.constant 0 : i32
    %c0_i32_0 = arith.constant 0 : i32
    %c0_i32_1 = arith.constant 0 : i32
    return %arg0, %c0_i32, %c0_i32_0 : i32, i32, i32
  }
}

</mosaic_0001>

<bundles_post_ra>
// kernel: cnn_decoder_forward.1
= control target key start
LH: loop header
LB: loop body
LE: loop exit
PB: predicated region body
PF: predicated region fallthrough
CT: control target
= control target key end

     0   :  { %s2641_s21 = smov 0   ;;  %s3364_s0 = inlined_call_operand.vmem [shape: f32[2,144,36], index: 0, kind: input, shape index: {}]   ;;  %s3365_s1 = inlined_call_operand.vmem [shape: f32[2,8,36], index: 1, kind: input, shape index: {}]   ;;  %s3366_s2 = inlined_call_operand.vmem [shape: f32[2,8,225], index: 2, kind: input, shape index: {}]   ;;  %s3367_s3 = inlined_call_operand.vmem [shape: bf16[8,144], index: 3, kind: input, shape index: {}]   ;;  %s3368_s4 = inlined_call_operand.vmem [shape: bf16[8,72], index: 4, kind: input, shape index: {}]   ;;  %s3369_s5 = inlined_call_operand.vmem [shape: bf16[3,72], index: 5, kind: input, shape index: {}]   ;;  %s3370_s6 = inlined_call_operand.vmem [shape: f32[8,1], index: 6, kind: input, shape index: {}]   ;;  %s3371_s7 = inlined_call_operand.vmem [shape: f32[8,1], index: 7, kind: input, shape index: {}]   ;;  %s3372_s8 = inlined_call_operand.vmem [shape: f32[8,1], index: 8, kind: input, shape index: {}]   ;;  %s3373_s9 = inlined_call_operand.vmem [shape: f32[8,1], index: 9, kind: input, shape index: {}]   ;;  %s3374_s10 = inlined_call_operand.vmem [shape: f32[8,1], index: 10, kind: input, shape index: {}]   ;;  %s3375_s11 = inlined_call_operand.vmem [shape: f32[8,1], index: 11, kind: input, shape index: {}]   ;;  %s3376_s12 = inlined_call_operand.vmem [shape: f32[3,1], index: 12, kind: input, shape index: {}]   ;;  %s3377_s13 = inlined_call_operand.vmem [shape: f32[1,291], index: 13, kind: input, shape index: {}]   ;;  %s3378_s14 = inlined_call_operand.vmem [shape: s32[1,255], index: 14, kind: input, shape index: {}]   ;;  %s3379_s15 = inlined_call_operand.vmem [shape: f32[1,1227], index: 15, kind: input, shape index: {}]   ;;  %s3380_s16 = inlined_call_operand.vmem [shape: f32[2,3,1155], index: 16, kind: output, shape index: {}]  }
   0x1   :  { %3381 = sst [smem:[#allocation6_spill]] %s3364_s0 }
   0x2   :  { %3382 = sst [smem:[#allocation7_spill]] %s3367_s3 }
   0x3 LB: > { %s2235_s22 = sadd.s32 4294967295, %s2480_s21   ;;  %p2239_p0 = scmp.ge.s32.totalorder %s2480_s21, 1  ;;  %s2480_s21 = sphi %s2641_s21, %s26_s21  }
   0x4   : > { %p481_p1 = scmp.lt.s32.totalorder %s2480_s21, 3 }
   0x6   : > { %p482_p2 = pnand %p2239_p0, %p481_p1 }
   0x7   : > { %p540_p3 = scmp.lt.s32.totalorder (!%p482_p2), %s2235_s22, 1  ;;  %s3383_s3 = sld [smem:[#allocation7_spill]] (!%p482_p2) }
   0x8   : > { %485 = sbr.rel (%p482_p2) target bundleno = 1419 (0x58b), region = 84  ;;  %s3384_s26 = sld [smem:[#allocation6_spill]] (!%p482_p2) }
   0x9   : > { %s2734_s19 = smov (!%p482_p2), 0  }
   0xd   : > { %v2652_v0 = vld [vmem:[%s3383_s3] sm:$0xff]  ;;  %vm600_vm0 = vcmask 130048   ;;  %v2542_v2 = vmov 0   ;;  %s3414_s22 = smov (!%p540_p3, %s2235_s22), 1  ;;  %v662_v35 = vlaneseq  ;;  %v2482_v56 = vmov 0.0  }
   0xe   : > { %v588_v1 = vld [vmem:[%s3370_s6] sm:$0xff]  ;;  %604 = vmatprep.subr.bf16.mxu0 %v2542_v2  ;;  %v2246_v3 = vcombine.high %v2652_v0, %v2652_v0  ;;  %2407 = vset.pattern.permute.xlu0 %v2542_v2  ;;  %s2263_s0 = smul.u32 144, %s3414_s22  ;;  %s2241_s17 = sshll.u32 %s3414_s22, 3  ;;  %v2245_v34 = vcombine.low %v2652_v0, %v2652_v0  ;;  %v2486_v57 = vmov 0.0   ;;  %v2490_v58 = vmov 0.0  }
   0xf   : > { %v652_v4 = vld [vmem:[%s3372_s8] sm:$0xff]  ;;  %591 = vperm.xlu0 %2407, %v588_v1   ;;  %2408 = vset.pattern.permute.xlu1 %v2542_v2  ;;  %s548_s20 = scalar_lea.vmem %s3365_s1, %s2241_s17  ;;  %s2262_s23 = sshll.u32 %s3414_s22, 4  ;;  %v2716_v36 = vshrl.u32 %v662_v35, 7  ;;  %v2732_v44 = vand.u32 127, %v662_v35 }
  0x10   : > { %2247 = vmatprep.mubr.msk.bf16.mxu0 %vm600_vm0, %v2246_v3  ;;  %v645_v5 = vld [vmem:[%s3371_s7] sm:$0xff]  ;;  %655 = vperm.xlu1 %2408, %v652_v4   ;;  %s2674_s27 = scalar_lea.vmem %s3384_s26, %s2263_s0  ;;  %s2679_s29 = scalar_lea.vmem %s3366_s2, %s2262_s23 }
  0x11   : > { %v2681_v6 = vld [vmem:[%s548_s20] sm:$0xff]  ;;  %s2264_s30 = smul.u32 40, %s3414_s22  ;;  %v575_v7 = vld [vmem:[%s2674_s27 + $0x70] sm:$0xff]  ;;  %v576_v8 = vld [vmem:[%s2674_s27 + $0x78] sm:$0xff]  ;;  %v2719_v37 = vsub.s32 0, %v2716_v36  ;;  %v2722_v38 = vsub.s32 1, %v2716_v36 }
  0x12   : > { %v573_v9 = vld [vmem:[%s2674_s27 + $0x60] sm:$0xff]  ;;  %v586_v10 = vpack.c.bf16 %v576_v8, %v575_v7  ;;  %v574_v11 = vld [vmem:[%s2674_s27 + $0x68] sm:$0xff]  ;;  %v571_v13 = vld [vmem:[%s2674_s27 + $0x50] sm:$0xff]  ;;  %v672_v39 = vsub.s32 2, %v2716_v36 }
  0x13   : > { %648 = vperm.xlu0 %2407, %v645_v5   ;;  %s2690_s17 = scalar_lea.vmem %s3380_s16, %s2264_s30  ;;  %v585_v12 = vpack.c.bf16 %v574_v11, %v573_v9  ;;  %v572_v14 = vld [vmem:[%s2674_s27 + $0x58] sm:$0xff]  ;;  %v569_v16 = vld [vmem:[%s2674_s27 + $0x40] sm:$0xff]  ;;  %v570_v17 = vld [vmem:[%s2674_s27 + $0x48] sm:$0xff] }
  0x14   : > { %605 = vmatpush1.bf16.msra.mxu0 %v586_v10  ;;  %v584_v15 = vpack.c.bf16 %v572_v14, %v571_v13  ;;  %v583_v18 = vpack.c.bf16 %v570_v17, %v569_v16  ;;  %v567_v19 = vld [vmem:[%s2674_s27 + $0x30] sm:$0xff]  ;;  %v568_v20 = vld [vmem:[%s2674_s27 + $0x38] sm:$0xff]  ;;  %v565_v22 = vld [vmem:[%s2674_s27 + $0x20] sm:$0xff] }
  0x15   : > { %606 = vmatprep.subr.bf16.mxu0 %v2542_v2  ;;  %v582_v21 = vpack.c.bf16 %v568_v20, %v567_v19  ;;  %v566_v23 = vld [vmem:[%s2674_s27 + $0x28] sm:$0xff]  ;;  %v563_v25 = vld [vmem:[%s2674_s27 + $0x10] sm:$0xff]  ;;  %v564_v26 = vld [vmem:[%s2674_s27 + $0x18] sm:$0xff] }
  0x16   : > { %v581_v24 = vpack.c.bf16 %v566_v23, %v565_v22  ;;  %v580_v27 = vpack.c.bf16 %v564_v26, %v563_v25  ;;  %v561_v28 = vld [vmem:[%s2674_s27] sm:$0xff]  ;;  %v562_v29 = vld [vmem:[%s2674_s27 + $0x8] sm:$0xff] }
  0x17   : > { %v579_v30 = vpack.c.bf16 %v562_v29, %v561_v28  ;;  %v577_v31 = vld [vmem:[%s2674_s27 + $0x80] sm:$0xff]  ;;  %v578_v32 = vld [vmem:[%s2674_s27 + $0x88] sm:$0xff] }
  0x18   : > { %607 = vmatpush1.bf16.msra.mxu0 %v585_v12  ;;  %v587_v33 = vpack.c.bf16 %v578_v32, %v577_v31  ;;  %v660_v40 = vld [vmem:[%s3377_s13] sm:$0x7] }
  0x19   : > { %608 = vmatprep.subr.bf16.mxu0 %v2542_v2  ;;  %v665_v41 = vrot.slane %v660_v40, %v2719_v37  ;;  %v669_v42 = vrot.slane %v660_v40, %v2722_v38  ;;  %v673_v43 = vrot.slane %v660_v40, %v672_v39 }
  0x1c   : > { %609 = vmatpush1.bf16.msra.mxu0 %v584_v15 }
  0x1d   : > { %610 = vmatprep.subr.bf16.mxu0 %v2542_v2 }
  0x20   : > { %611 = vmatpush1.bf16.msra.mxu0 %v583_v18 }
  0x21   : > { %612 = vmatprep.subr.bf16.mxu0 %v2542_v2 }
  0x24   : > { %613 = vmatpush1.bf16.msra.mxu0 %v582_v21 }
  0x25   : > { %614 = vmatprep.subr.bf16.mxu0 %v2542_v2 }
  0x28   : > { %615 = vmatpush1.bf16.msra.mxu0 %v581_v24 }
  0x29   : > { %616 = vmatprep.subr.bf16.mxu0 %v2542_v2 }
  0x2c   : > { %617 = vmatpush1.bf16.msra.mxu0 %v580_v27 }
  0x2d   : > { %618 = vmatprep.subr.bf16.mxu0 %v2542_v2 }
  0x30   : > { %619 = vmatpush1.bf16.msra.mxu0 %v579_v30 }
  0x31   : > { %634 = vmatprep.subr.bf16.mxu0 %v2542_v2 }
  0x34   : > { %635 = vmatpush2.bf16.msra.mxu0 %v587_v33 }
  0x37   : > { %637 = vmatmul.mubr.bf16.vlgmr.msra.gmra.mxu0 %v2245_v34 }
  0x8a   : > { %v592_v45 = vpop.permute.xlu0 %591 }
  0x8b   : > { %v656_v50 = vpop.permute.xlu1 %655 }
  0x8e   : > { %v649_v51 = vpop.permute.xlu0 %648 }
  0xf7   : > { %v638_v46 = vpop.f32.mrf.mxu0 }
  0xf8   : > { %v639_v47 = vadd.f32 %v638_v46, %v592_v45 }
  0xf9   : > { %v640_v48 = vpop.f32.mrf.mxu0 }
  0xfa   : > { %v644_v49 = vmax.f32 %v639_v47, 0.0 }
  0xfb   : > { %v641_v52 = vpop.f32.mrf.mxu0 }
  0xfc   : > { %v651_v53 = vmul.f32 %v649_v51, %v644_v49 }
  0xfd   : > { %v642_v54 = vpop.f32.mrf.mxu0 }
  0xfe   : > { %v658_v55 = vadd.f32 %v656_v50, %v651_v53 }
  0xff LB: >> { %v688_v59 = vstv %s2496_s19  ;;  %vm693_vm1 = vcmask 293888   ;;  %s684_s19 = sadd.s32 1, %s2496_s19   ;;  %s2496_s19 = sphi %s2734_s19, %s684_s19   ;;  %v2492_v58 = vphi %v2490_v58, %v2491_v58   ;;  %v2488_v57 = vphi %v2486_v57, %v2487_v57   ;;  %v2484_v56 = vphi %v2482_v56, %v2483_v56  }
 0x100   : >> { %vm689_vm2 = vcmp.eq.s32.totalorder %v2732_v44, %v688_v59  ;;  %p681_p4 = scmp.ge.s32.totalorder %s684_s19, 36  }
 0x101   : >> { %v697_v60 = vsel %vm689_vm2, %v2681_v6, 0.0  ;;  %v692_v61 = vsel %vm689_vm2, %v658_v55, 0.0  ;;  %vm712_vm6 = vcmask (%p681_p4), 285696   ;;  %vm717_vm7 = vcmask (%p681_p4), 1039360   ;;  %943 = vmatprep.mubr.bf16.mxu1 (%p681_p4), %v2542_v2  ;;  %2411 = vset.pattern.permute.xlu1 (%p681_p4), %v2542_v2  ;;  %s2543_s20 = smov (%p681_p4), 94   ;;  %s2544_s23 = smov (%p681_p4), 92  }
 0x102   : >> { %v698_v62 = vsel %vm693_vm1, %v697_v60, 0.0  ;;  %v694_v63 = vsel %vm693_vm1, %v692_v61, 0.0  ;;  %2412 = vset.pattern.permute.xlu0 (%p681_p4), %v2542_v2  ;;  %s2545_s24 = smov (%p681_p4), 93   ;;  %s2546_s25 = smov (%p681_p4), 110   ;;  %v894_v10 = vld [vmem:[%s3373_s9] sm:$0xff] (%p681_p4)  ;;  %vm858_vm8 = vcmask (%p681_p4), 752640  }
 0x103   : >> { %699 = vadd.xlane.f32.xlu0 %v698_v62  ;;  %s2547_s26 = smov (%p681_p4), 109   ;;  %s2548_s27 = smov (%p681_p4), 126   ;;  %v954_v11 = vld [vmem:[%s3374_s10] sm:$0xff] (%p681_p4)  ;;  %vm820_vm9 = vcmask (%p681_p4), 769024   ;;  %vm839_vm10 = vcmask (%p681_p4), 760832   ;;  %vm904_vm11 = vcmask (%p681_p4), 1043456  }
 0x104   : > { %s2549_s28 = smov (%p681_p4), 111   ;;  %s2550_s30 = smov (%p681_p4), 127   ;;  %v962_v12 = vld [vmem:[%s3375_s11] sm:$0xff] (%p681_p4)  ;;  %vm782_vm12 = vcmask (%p681_p4), 900096   ;;  %vm801_vm13 = vcmask (%p681_p4), 891904   ;;  %vm744_vm14 = vcmask (%p681_p4), 1031168  }
 0x105   : > { %vm763_vm15 = vcmask (%p681_p4), 908288   ;;  %vm900_vm0 = vcmask (%p681_p4), 588800  }
 0x107   : >> { %695 = vadd.xlane.f32.xlu0 %v694_v63 }
 0x18c   : >> { %v700_v0 = vpop.xlane.xlu0 %699 }
 0x18d   : >> { %vm701_vm3 = vcmp.eq.f32.partialorder %v665_v41, %v700_v0  ;;  %vm702_vm4 = vcmp.eq.f32.partialorder %v669_v42, %v700_v0  ;;  %vm703_vm5 = vcmp.eq.f32.partialorder %v673_v43, %v700_v0 }
 0x190   : >> { %v696_v1 = vpop.xlane.xlu0 %695 }
 0x191   : >> { %v704_v3 = vsel %vm701_vm3, %v696_v1, 0.0  ;;  %v705_v4 = vsel %vm702_vm4, %v696_v1, 0.0  ;;  %v706_v5 = vsel %vm703_vm5, %v696_v1, 0.0  ;;  %683 = sbr.rel (!%p681_p4) target bundleno = 255 (0xff), region = 134 }
 0x192   : >> { %v2739_v58 = vadd.f32 %v2492_v58, %v704_v3   ;;  %v708_v8 = vadd.f32 %v2488_v57, %v705_v4   ;;  %v709_v9 = vadd.f32 %v2484_v56, %v706_v5  }
 0x194   : >> { %v3385_v7 = vmov %v2739_v58  ;;  %v2483_v56 = vmov %v709_v9   ;;  %v2487_v57 = vmov %v708_v8   ;;  %816 = vrot.lane.b32.xlu1 (%p681_p4), %v708_v8, %s2543_s20  ;;  %713 = vst.msk [vmem:[#allocation2 + $0x10] sm:$0xff] (%p681_p4), %vm712_vm6, %v709_v9 }
 0x195   : >> { %v2491_v58 = vmov %v3385_v7   ;;  %852 = vrot.lane.b32.xlu0 (%p681_p4), %v3385_v7, %s2544_s23  ;;  %718 = vst.msk [vmem:[#allocation3 + $0x8] sm:$0xff] (%p681_p4), %vm717_vm7, %v708_v8 }
 0x198   : > { %835 = vrot.lane.b32.xlu1 %v708_v8, %s2545_s24 }
 0x199   : > { %854 = vrot.lane.b32.xlu0 %v708_v8, %s2544_s23 }
 0x19b   : > { %v848_v6 = vld [vmem:[#allocation2 + $0x10] sm:$0xff] }
 0x19c   : > { %856 = vrot.lane.b32.xlu1 %v848_v6, %s2544_s23 }
 0x19d   : > { %818 = vrot.lane.b32.xlu0 %v848_v6, %s2543_s20 }
 0x1a0   : > { %814 = vrot.lane.b32.xlu1 %v3385_v7, %s2543_s20 }
 0x1a1   : > { %837 = vrot.lane.b32.xlu0 %v848_v6, %s2545_s24 }
 0x1a4   : > { %778 = vrot.lane.b32.xlu1 %v708_v8, %s2546_s25 }
 0x1a5   : > { %833 = vrot.lane.b32.xlu0 %v3385_v7, %s2545_s24 }
 0x1a8   : > { %797 = vrot.lane.b32.xlu1 %v708_v8, %s2547_s26 }
 0x1a9   : > { %780 = vrot.lane.b32.xlu0 %v848_v6, %s2546_s25 }
 0x1ac   : > { %776 = vrot.lane.b32.xlu1 %v3385_v7, %s2546_s25 }
 0x1ad   : > { %799 = vrot.lane.b32.xlu0 %v848_v6, %s2547_s26 }
 0x1b0   : > { %740 = vrot.lane.b32.xlu1 %v708_v8, %s2548_s27 }
 0x1b1   : > { %795 = vrot.lane.b32.xlu0 %v3385_v7, %s2547_s26 }
 0x1b4   : > { %759 = vrot.lane.b32.xlu1 %v708_v8, %s2549_s28 }
 0x1b5   : > { %742 = vrot.lane.b32.xlu0 %v848_v6, %s2548_s27 }
 0x1b8   : > { %738 = vrot.lane.b32.xlu1 %v3385_v7, %s2548_s27 }
 0x1b9   : > { %761 = vrot.lane.b32.xlu0 %v848_v6, %s2549_s28 }
 0x1bc   : > { %723 = vrot.lane.b32.xlu1 %v3385_v7, %s2550_s30 }
 0x1bd   : > { %757 = vrot.lane.b32.xlu0 %v3385_v7, %s2549_s28 }
 0x1c0   : > { %897 = vperm.xlu1 %2411, %v894_v10   ;;  %v867_v10 = vld [vmem:[#allocation3 + $0x8] sm:$0xff] }
 0x1c1   : > { %725 = vrot.lane.b32.xlu0 %v708_v8, %s2550_s30 }
 0x1c4   : > { %965 = vperm.xlu1 %2411, %v962_v12  }
 0x1c5   : > { %957 = vperm.xlu0 %2412, %v954_v11  }
 0x206   : > { %v817_v13 = vpop.permute.xlu1 %816 }
 0x207   : > { %v853_v14 = vpop.permute.xlu0 %852 }
 0x20a   : > { %v836_v15 = vpop.permute.xlu1 %835 }
 0x20b   : > { %v855_v16 = vpop.permute.xlu0 %854 }
 0x20c   : > { %v859_v17 = vsel %vm858_vm8, %v853_v14, %v855_v16  ;;  %v865_v14 = vld [vmem:[%s3368_s4] sm:$0xf] }
 0x20d   : > { %v892_v28 = vpack.c.bf16 %v859_v17, %v859_v17  ;;  %v998_v17 = vsub.s32 5, %v2716_v36 }
 0x20e   : > { %v857_v18 = vpop.permute.xlu1 %856 }
 0x20f   : > { %v819_v19 = vpop.permute.xlu0 %818  ;;  %v860_v20 = vsel %vm858_vm8, %v855_v16, %v857_v18  ;;  %v906_v34 = vsel %vm904_vm11, %v892_v28, 0  ;;  %v994_v16 = vsub.s32 4, %v2716_v36  ;;  %v1002_v18 = vsub.s32 6, %v2716_v36 }
 0x210   : > { %v822_v21 = vsel %vm820_vm9, %v817_v13, %v819_v19  ;;  %864 = vst.msk [vmem:[#allocation3 + $0x88] sm:$0xff] %vm717_vm7, %v860_v20  ;;  %v2812_v19 = vld [vmem:[%s3379_s15 + $0x8] sm:$0x3]  ;;  %v1006_v20 = vsub.s32 7, %v2716_v36 }
 0x211   : > { %826 = vst.msk [vmem:[#allocation3 + $0x68] sm:$0xff] %vm717_vm7, %v822_v21  ;;  %v2816_v21 = vld [vmem:[%s2679_s29] sm:$0xff] }
 0x212   : > { %v815_v23 = vpop.permute.xlu1 %814 }
 0x213   : > { %v838_v22 = vpop.permute.xlu0 %837  ;;  %v821_v25 = vsel %vm820_vm9, %v815_v23, %v817_v13 }
 0x214   : > { %v841_v24 = vsel %vm839_vm10, %v836_v15, %v838_v22  ;;  %v2819_v22 = vld [vmem:[%s2679_s29 + $0x8] sm:$0xff]  ;;  %s2881_s29 = smov 0  }
 0x215   : > { %845 = vst.msk [vmem:[#allocation3 + $0x78] sm:$0xff] %vm717_vm7, %v841_v24 }
 0x216   : > { %v779_v27 = vpop.permute.xlu1 %778 }
 0x217   : > { %v834_v26 = vpop.permute.xlu0 %833  ;;  %v883_v30 = vld [vmem:[#allocation3 + $0x88] sm:$0xff] }
 0x218   : > { %v840_v29 = vsel %vm839_vm10, %v834_v26, %v836_v15  ;;  %v893_v31 = vpack.c.bf16 %v883_v30, %v883_v30  ;;  %v879_v40 = vld [vmem:[#allocation3 + $0x68] sm:$0xff]  ;;  %v990_v15 = vsub.s32 3, %v2716_v36 }
 0x219   : > { %v890_v43 = vpack.c.bf16 %v840_v29, %v821_v25 }
 0x21a   : > { %2248 = vmatprep.subr.msk.bf16.mxu1 %vm904_vm11, %v893_v31  ;;  %v798_v33 = vpop.permute.xlu1 %797  ;;  %v1015_v31 = vrot.slane %v2812_v19, %v2722_v38 }
 0x21b   : > { %v781_v32 = vpop.permute.xlu0 %780  ;;  %918 = vmatpush1.bf16.msra.mxu1 %v906_v34 }
 0x21c   : > { %v784_v35 = vsel %vm782_vm12, %v779_v27, %v781_v32  ;;  %v881_v41 = vld [vmem:[#allocation3 + $0x78] sm:$0xff]  ;;  %v2855_v32 = vadd.s32 128, %v2732_v44 }
 0x21d   : > { %788 = vst.msk [vmem:[#allocation3 + $0x48] sm:$0xff] %vm717_vm7, %v784_v35  ;;  %v891_v42 = vpack.c.bf16 %v881_v41, %v879_v40 }
 0x21e   : > { %v777_v46 = vpop.permute.xlu1 %776 }
 0x21f   : > { %919 = vmatprep.subr.bf16.mxu1 %v891_v42  ;;  %v800_v45 = vpop.permute.xlu0 %799  ;;  %v783_v48 = vsel %vm782_vm12, %v777_v46, %v779_v27  ;;  %v2836_v27 = vld [vmem:[%s3378_s14] sm:$0x3] }
 0x220   : > { %v803_v47 = vsel %vm801_vm13, %v798_v33, %v800_v45  ;;  %920 = vmatpush1.bf16.msra.mxu1 %v890_v43 }
 0x221   : > { %807 = vst.msk [vmem:[#allocation3 + $0x58] sm:$0xff] %vm717_vm7, %v803_v47 }
 0x222   : > { %v741_v50 = vpop.permute.xlu1 %740 }
 0x223   : > { %v796_v49 = vpop.permute.xlu0 %795 }
 0x224   : > { %v802_v51 = vsel %vm801_vm13, %v796_v49, %v798_v33  ;;  %v875_v55 = vld [vmem:[#allocation3 + $0x48] sm:$0xff] }
 0x225   : > { %v888_v58 = vpack.c.bf16 %v802_v51, %v783_v48 }
 0x226   : > { %v760_v53 = vpop.permute.xlu1 %759 }
 0x227   : > { %v743_v52 = vpop.permute.xlu0 %742 }
 0x228   : > { %v746_v54 = vsel %vm744_vm14, %v741_v50, %v743_v52  ;;  %v877_v56 = vld [vmem:[#allocation3 + $0x58] sm:$0xff] }
 0x229   : > { %750 = vst.msk [vmem:[#allocation3 + $0x28] sm:$0xff] %vm717_vm7, %v746_v54  ;;  %v889_v57 = vpack.c.bf16 %v877_v56, %v875_v55  ;;  %v2863_v54 = vmov 0.0   ;;  %v2865_v55 = vmov 0.0   ;;  %v2867_v56 = vmov 0.0  }
 0x22a   : > { %v739_v60 = vpop.permute.xlu1 %738 }
 0x22b   : > { %921 = vmatprep.subr.bf16.mxu1 %v889_v57  ;;  %v762_v59 = vpop.permute.xlu0 %761  ;;  %v745_v62 = vsel %vm744_vm14, %v739_v60, %v741_v50  ;;  %v2869_v57 = vmov 0.0   ;;  %v2875_v60 = vmov 0.0  }
 0x22c   : > { %v765_v61 = vsel %vm763_vm15, %v760_v53, %v762_v59  ;;  %922 = vmatpush1.bf16.msra.mxu1 %v888_v58  ;;  %v2871_v58 = vmov 0.0   ;;  %v2873_v59 = vmov 0.0  }
 0x22d   : > { %769 = vst.msk [vmem:[#allocation3 + $0x38] sm:$0xff] %vm717_vm7, %v765_v61  ;;  %v2877_v61 = vmov 0.0  }
 0x22e   : > { %v724_v1 = vpop.permute.xlu1 %723 }
 0x22f   : > { %v758_v63 = vpop.permute.xlu0 %757 }
 0x230   : > { %v764_v0 = vsel %vm763_vm15, %v758_v63, %v760_v53  ;;  %v871_v5 = vld [vmem:[#allocation3 + $0x28] sm:$0xff]  ;;  %v2861_v53 = vmov 0.0  }
 0x231   : > { %v886_v6 = vpack.c.bf16 %v764_v0, %v745_v62  ;;  %v2879_v62 = vmov 0.0  }
 0x233   : > { %v726_v3 = vpop.permute.xlu0 %725 }
 0x234   : > { %731 = vst.msk [vmem:[#allocation3 + $0x18] sm:$0xff] %vm717_vm7, %v726_v3  ;;  %v727_v4 = vsel %vm717_vm7, %v724_v1, %v726_v3  ;;  %v873_v8 = vld [vmem:[#allocation3 + $0x38] sm:$0xff] }
 0x235   : > { %v887_v9 = vpack.c.bf16 %v873_v8, %v871_v5  ;;  %v884_v13 = vpack.c.bf16 %v727_v4, %v3385_v7  ;;  %v2807_v7 = vld [vmem:[%s3379_s15] sm:$0xff] }
 0x236   : > { %v979_v23 = vrot.slane %v2807_v7, %v2719_v37  ;;  %v983_v24 = vrot.slane %v2807_v7, %v2722_v38  ;;  %v2828_v25 = vrot.slane %v2807_v7, %v672_v39  ;;  %v2831_v26 = vrot.slane %v2807_v7, %v990_v15 }
 0x237   : > { %923 = vmatprep.subr.bf16.mxu1 %v887_v9  ;;  %v2839_v28 = vrot.slane %v2807_v7, %v994_v16  ;;  %v2842_v29 = vrot.slane %v2807_v7, %v998_v17  ;;  %v2845_v30 = vrot.slane %v2807_v7, %v1002_v18  ;;  %v2848_v36 = vrot.slane %v2807_v7, %v1006_v20 }
 0x238   : > { %924 = vmatpush1.bf16.msra.mxu1 %v886_v6  ;;  %v1011_v39 = vrot.slane %v2812_v19, %v2719_v37 }
 0x23b   : > { %v869_v11 = vld [vmem:[#allocation3 + $0x18] sm:$0xff]  ;;  %v898_v33 = vpop.permute.xlu1 %897 }
 0x23c   : > { %v885_v12 = vpack.c.bf16 %v869_v11, %v867_v10 }
 0x23e   : > { %925 = vmatprep.subr.bf16.mxu1 %v885_v12 }
 0x23f   : > { %926 = vmatpush1.bf16.msra.mxu1 %v884_v13  ;;  %v966_v48 = vpop.permute.xlu1 %965 }
 0x240   : > { %v958_v41 = vpop.permute.xlu0 %957 }
 0x242   : > { %2249 = vmatmul.mubr.msk.bf16.vlgmr.msra.gmra.mxu1 %vm900_vm0, %v865_v14 }
 0x302   : > { %v945_v34 = vpop.f32.mrf.mxu1 }
 0x303   : > { %v946_v35 = vadd.f32 %v945_v34, %v898_v33 }
 0x304   : > { %v947_v40 = vpop.f32.mrf.mxu1 }
 0x305   : > { %v952_v42 = vmax.f32 %v946_v35, 0.0  ;;  %v948_v43 = vadd.f32 %v947_v40, %v898_v33 }
 0x306   : > { %v949_v45 = vpop.f32.mrf.mxu1 }
 0x307   : > { %v953_v46 = vmax.f32 %v948_v43, 0.0  ;;  %v960_v47 = vmul.f32 %v958_v41, %v952_v42 }
 0x308   : > { %v950_v49 = vpop.f32.mrf.mxu1 }
 0x309   : > { %v961_v50 = vmul.f32 %v958_v41, %v953_v46  ;;  %v2857_v51 = vadd.f32 %v966_v48, %v960_v47 }
 0x30b   : > { %v2859_v52 = vadd.f32 %v966_v48, %v961_v50 }
 0x30c LB: >> { %v1044_v63 = vstv %s2540_s29  ;;  %vm1071_vm1 = vcmask 793600   ;;  %v2551_v3 = vmov 0   ;;  %s1033_s29 = sadd.s32 1, %s2540_s29   ;;  %s2540_s29 = sphi %s2881_s29, %s1033_s29   ;;  %v2536_v62 = vphi %v2879_v62, %v3412_v62   ;;  %v2532_v61 = vphi %v2877_v61, %v3411_v61   ;;  %v2528_v60 = vphi %v2875_v60, %v3410_v60   ;;  %v2524_v59 = vphi %v2873_v59, %v3409_v59   ;;  %v2520_v58 = vphi %v2871_v58, %v3408_v58   ;;  %v2516_v57 = vphi %v2869_v57, %v3407_v57   ;;  %v2512_v56 = vphi %v2867_v56, %v3406_v56   ;;  %v2508_v55 = vphi %v2865_v55, %v3405_v55   ;;  %v2504_v54 = vphi %v2863_v54, %v3404_v54   ;;  %v2500_v53 = vphi %v2861_v53, %v3403_v53  }
 0x30d   : >> { %vm1046_vm2 = vcmp.eq.s32.totalorder %v2732_v44, %v1044_v63  ;;  %vm1047_vm3 = vcmp.eq.s32.totalorder %v2855_v32, %v1044_v63  ;;  %vm1045_vm4 = vcmp.eq.s32.totalorder %v2836_v27, %v1044_v63  ;;  %p1030_p5 = scmp.ge.s32.totalorder %s1033_s29, 225  }
 0x30e   : >> { %v1069_v0 = vsel %vm1046_vm2, %v2816_v21, 0.0  ;;  %v1070_v1 = vsel %vm1047_vm3, %v2819_v22, 0.0  ;;  %v1048_v4 = vsel %vm1045_vm4, 1, %v2551_v3  ;;  %1906 = vmatprep.mubr.bf16.mxu1 (%p1030_p5), %v2542_v2  ;;  %1947 = vmatprep.mubr.bf16.mxu0 (%p1030_p5), %v2542_v2  ;;  %s2552_s20 = smov (%p1030_p5), 56   ;;  %s2553_s25 = smov (%p1030_p5), 58  }
 0x30f   : >> { %v1072_v5 = vsel %vm1071_vm1, %v1070_v1, 0.0  ;;  %v1052_v8 = vrot.slane %v1048_v4, %v2719_v37  ;;  %v1056_v9 = vrot.slane %v1048_v4, %v2722_v38  ;;  %2413 = vset.pattern.permute.xlu0 (%p1030_p5), %v2542_v2  ;;  %s2554_s26 = smov (%p1030_p5), 57   ;;  %s2555_s28 = smov (%p1030_p5), 91  }
 0x310   : >> { %v1073_v6 = vadd.f32 %v1072_v5, %v1069_v0 }
 0x311   : >> { %vm1057_vm5 = vcmp.eq.s32.totalorder %v1052_v8, 1  ;;  %vm1058_vm6 = vcmp.eq.s32.totalorder %v1056_v9, 1 }
 0x312   : >> { %1074 = vadd.xlane.f32.xlu0 %v1073_v6  ;;  %v1059_v10 = vsel %vm1057_vm5, %v2857_v51, 0.0  ;;  %v1060_v11 = vsel %vm1058_vm6, %v2859_v52, 0.0 }
 0x313   : >> { %v1061_v12 = vsel %vm717_vm7, %v1060_v11, 0.0 }
 0x314   : >> { %v1062_v13 = vadd.f32 %v1061_v12, %v1059_v10 }
 0x316   : >> { %1063 = vadd.xlane.f32.xlu0 %v1062_v13 }
 0x39b   : >> { %v1075_v14 = vpop.xlane.xlu0 %1074 }
 0x39c   : >> { %vm2912_vm9 = vcmp.eq.f32.partialorder %v979_v23, %v1075_v14  ;;  %vm2919_vm12 = vcmp.eq.f32.partialorder %v983_v24, %v1075_v14  ;;  %vm1078_vm13 = vcmp.eq.f32.partialorder %v2828_v25, %v1075_v14  ;;  %vm1079_vm15 = vcmp.eq.f32.partialorder %v2831_v26, %v1075_v14 }
 0x39d   : >> { %vm1080_vm1 = vcmp.eq.f32.partialorder %v2839_v28, %v1075_v14  ;;  %vm1081_vm2 = vcmp.eq.f32.partialorder %v2842_v29, %v1075_v14  ;;  %vm1082_vm3 = vcmp.eq.f32.partialorder %v2845_v30, %v1075_v14  ;;  %vm1083_vm4 = vcmp.eq.f32.partialorder %v2848_v36, %v1075_v14 }
 0x39e   : >> { %vm2932_vm5 = vcmp.eq.f32.partialorder %v1011_v39, %v1075_v14  ;;  %vm2939_vm6 = vcmp.eq.f32.partialorder %v1015_v31, %v1075_v14 }
 0x39f   : >> { %v1064_v20 = vpop.xlane.xlu0 %1063 }
 0x3a0   : >> { %v1086_v33 = vsel %vm2912_vm9, %v1064_v20, 0.0  ;;  %v1087_v34 = vsel %vm2919_vm12, %v1064_v20, 0.0  ;;  %v1088_v35 = vsel %vm1078_vm13, %v1064_v20, 0.0  ;;  %v1089_v40 = vsel %vm1079_vm15, %v1064_v20, 0.0 }
 0x3a1   : >> { %v1090_v41 = vsel %vm1080_vm1, %v1064_v20, 0.0  ;;  %v1091_v42 = vsel %vm1081_vm2, %v1064_v20, 0.0  ;;  %v1092_v43 = vsel %vm1082_vm3, %v1064_v20, 0.0  ;;  %v1093_v45 = vsel %vm1083_vm4, %v1064_v20, 0.0 }
 0x3a2   : >> { %v1094_v46 = vsel %vm2932_vm5, %v1064_v20, 0.0  ;;  %v1095_v47 = vsel %vm2939_vm6, %v1064_v20, 0.0  ;;  %v2951_v62 = vadd.f32 %v2536_v62, %v1086_v33   ;;  %v2953_v61 = vadd.f32 %v2532_v61, %v1087_v34  }
 0x3a3   : >> { %v2955_v60 = vadd.f32 %v2528_v60, %v1088_v35   ;;  %v2957_v59 = vadd.f32 %v2524_v59, %v1089_v40   ;;  %v2959_v58 = vadd.f32 %v2520_v58, %v1090_v41   ;;  %v2961_v57 = vadd.f32 %v2516_v57, %v1091_v42   ;;  %v1835_v41 = vld [vmem:[%s3376_s12] sm:$0x7] (%p1030_p5) }
 0x3a4   : >> { %v3394_v48 = vmov %v2951_v62  ;;  %v3395_v49 = vmov %v2953_v61  ;;  %v2963_v56 = vadd.f32 %v2512_v56, %v1092_v43   ;;  %v2965_v55 = vadd.f32 %v2508_v55, %v1093_v45  }
 0x3a5   : >> { %v3396_v50 = vmov %v2955_v60  ;;  %v3397_v63 = vmov %v2957_v59  ;;  %v3398_v0 = vmov %v2959_v58  ;;  %v3399_v1 = vmov %v2961_v57  ;;  %1032 = sbr.rel (!%p1030_p5) target bundleno = 780 (0x30c), region = 145  ;;  %1644 = vrot.lane.b32.xlu0 (%p1030_p5), %v3394_v48, %s2552_s20 }
 0x3a6   : >> { %v3400_v3 = vmov %v2963_v56  ;;  %v3401_v4 = vmov %v2965_v55  ;;  %v2967_v54 = vadd.f32 %v2504_v54, %v1094_v46   ;;  %v1105_v8 = vadd.f32 %v2500_v53, %v1095_v47   ;;  %1648 = vrot.lane.b32.xlu1 (%p1030_p5), %v3396_v50, %s2552_s20 }
 0x3a7   : >> { %v3405_v55 = vmov %v3401_v4  ;;  %v3406_v56 = vmov %v3400_v3  ;;  %v3407_v57 = vmov %v3399_v1  ;;  %v3408_v58 = vmov %v3398_v0  ;;  %1112 = vst [vmem:[#allocation4 + $0x30] sm:$0xff] (%p1030_p5), %v3400_v3 }
 0x3a8   : >> { %v3402_v5 = vmov %v2967_v54  ;;  %v3403_v53 = vmov %v1105_v8  ;;  %v3409_v59 = vmov %v3397_v63  ;;  %v3410_v60 = vmov %v3396_v50 }
 0x3a9   : >> { %v3404_v54 = vmov %v3402_v5  ;;  %v3411_v61 = vmov %v3395_v49  ;;  %v3412_v62 = vmov %v3394_v48  ;;  %vm1115_vm9 = vcmask (%p1030_p5), 613376   ;;  %1646 = vrot.lane.b32.xlu0 (%p1030_p5), %v3395_v49, %s2552_s20 }
 0x3aa   : > { %1116 = vst.msk [vmem:[#allocation4 + $0x48] sm:$0xff] %vm1115_vm9, %v1105_v8  ;;  %1506 = vrot.lane.b32.xlu1 %v3395_v49, %s2553_s25  ;;  %vm1136_vm12 = vcmask 23552   ;;  %vm1664_vm13 = vcmask 457728   ;;  %vm1524_vm15 = vcmask 474112   ;;  %vm1594_vm1 = vcmask 465920  }
 0x3ab   : > { %vm1454_vm2 = vcmask 744448  }
 0x3ad   : > { %1508 = vrot.lane.b32.xlu0 %v3396_v50, %s2553_s25 }
 0x3ae   : > { %1576 = vrot.lane.b32.xlu1 %v3395_v49, %s2554_s26  ;;  %v3176_v61 = vld [vmem:[#allocation4 + $0x30] sm:$0xff] }
 0x3b1   : > { %1578 = vrot.lane.b32.xlu0 %v3396_v50, %s2554_s26  ;;  %v3110_v37 = vld [vmem:[#allocation4 + $0x48] sm:$0xff] }
 0x3b2   : > { %1504 = vrot.lane.b32.xlu1 %v3394_v48, %s2553_s25  ;;  %1137 = vst.msk [vmem:[#allocation5 + $0x48] sm:$0xff] %vm1136_vm12, %v3110_v37 }
 0x3b5   : > { %1574 = vrot.lane.b32.xlu0 %v3394_v48, %s2554_s26 }
 0x3b6   : > { %1367 = vrot.lane.b32.xlu1 %v3395_v49, %s2544_s23 }
 0x3b9   : > { %1369 = vrot.lane.b32.xlu0 %v3396_v50, %s2544_s23 }
 0x3ba   : > { %1436 = vrot.lane.b32.xlu1 %v3395_v49, %s2555_s28 }
 0x3bd   : > { %1438 = vrot.lane.b32.xlu0 %v3396_v50, %s2555_s28 }
 0x3be   : > { %1365 = vrot.lane.b32.xlu1 %v3394_v48, %s2544_s23 }
 0x3c1   : > { %1434 = vrot.lane.b32.xlu0 %v3394_v48, %s2555_s28 }
 0x3c2   : > { %1229 = vrot.lane.b32.xlu1 %v3395_v49, %s2548_s27 }
 0x3c5   : > { %1231 = vrot.lane.b32.xlu0 %v3396_v50, %s2548_s27 }
 0x3c6   : > { %1298 = vrot.lane.b32.xlu1 %v3395_v49, %s2545_s24 }
 0x3c9   : > { %1300 = vrot.lane.b32.xlu0 %v3396_v50, %s2545_s24 }
 0x3ca   : > { %1227 = vrot.lane.b32.xlu1 %v3394_v48, %s2548_s27 }
 0x3cd   : > { %1296 = vrot.lane.b32.xlu0 %v3394_v48, %s2545_s24 }
 0x3ce   : > { %1160 = vrot.lane.b32.xlu1 %v3395_v49, %s2550_s30 }
 0x3d1   : > { %1162 = vrot.lane.b32.xlu0 %v3396_v50, %s2550_s30 }
 0x3d2   : > { %1158 = vrot.lane.b32.xlu1 %v3394_v48, %s2550_s30 }
 0x3d5   : > { %1650 = vrot.lane.b32.xlu0 %v3397_v63, %s2552_s20 }
 0x3d6   : > { %1652 = vrot.lane.b32.xlu1 %v3398_v0, %s2552_s20 }
 0x3d9   : > { %1654 = vrot.lane.b32.xlu0 %v3399_v1, %s2552_s20 }
 0x3da   : > { %1656 = vrot.lane.b32.xlu1 %v3400_v3, %s2552_s20 }
 0x3dd   : > { %1510 = vrot.lane.b32.xlu0 %v3397_v63, %s2553_s25 }
 0x3de   : > { %1512 = vrot.lane.b32.xlu1 %v3398_v0, %s2553_s25 }
 0x3e1   : > { %1514 = vrot.lane.b32.xlu0 %v3399_v1, %s2553_s25 }
 0x3e2   : > { %1516 = vrot.lane.b32.xlu1 %v3400_v3, %s2553_s25 }
 0x3e5   : > { %1580 = vrot.lane.b32.xlu0 %v3397_v63, %s2554_s26 }
 0x3e6   : > { %1582 = vrot.lane.b32.xlu1 %v3398_v0, %s2554_s26 }
 0x3e9   : > { %1584 = vrot.lane.b32.xlu0 %v3399_v1, %s2554_s26 }
 0x3ea   : > { %1586 = vrot.lane.b32.xlu1 %v3400_v3, %s2554_s26 }
 0x3ed   : > { %1371 = vrot.lane.b32.xlu0 %v3397_v63, %s2544_s23 }
 0x3ee   : > { %1373 = vrot.lane.b32.xlu1 %v3398_v0, %s2544_s23 }
 0x3f1   : > { %1375 = vrot.lane.b32.xlu0 %v3399_v1, %s2544_s23 }
 0x3f2   : > { %1377 = vrot.lane.b32.xlu1 %v3400_v3, %s2544_s23 }
 0x3f5   : > { %1440 = vrot.lane.b32.xlu0 %v3397_v63, %s2555_s28 }
 0x3f6   : > { %1442 = vrot.lane.b32.xlu1 %v3398_v0, %s2555_s28 }
 0x3f9   : > { %1444 = vrot.lane.b32.xlu0 %v3399_v1, %s2555_s28 }
 0x3fa   : > { %1446 = vrot.lane.b32.xlu1 %v3400_v3, %s2555_s28 }
 0x3fd   : > { %1233 = vrot.lane.b32.xlu0 %v3397_v63, %s2548_s27 }
 0x3fe   : > { %1235 = vrot.lane.b32.xlu1 %v3398_v0, %s2548_s27 }
 0x401   : > { %1237 = vrot.lane.b32.xlu0 %v3399_v1, %s2548_s27 }
 0x402   : > { %1239 = vrot.lane.b32.xlu1 %v3400_v3, %s2548_s27 }
 0x405   : > { %1302 = vrot.lane.b32.xlu0 %v3397_v63, %s2545_s24 }
 0x406   : > { %1304 = vrot.lane.b32.xlu1 %v3398_v0, %s2545_s24 }
 0x409   : > { %1306 = vrot.lane.b32.xlu0 %v3399_v1, %s2545_s24 }
 0x40a   : > { %1308 = vrot.lane.b32.xlu1 %v3400_v3, %s2545_s24 }
 0x40d   : > { %1164 = vrot.lane.b32.xlu0 %v3397_v63, %s2550_s30 }
 0x40e   : > { %1166 = vrot.lane.b32.xlu1 %v3398_v0, %s2550_s30 }
 0x411   : > { %1168 = vrot.lane.b32.xlu0 %v3399_v1, %s2550_s30 }
 0x412   : > { %1170 = vrot.lane.b32.xlu1 %v3400_v3, %s2550_s30 }
 0x415   : > { %1658 = vrot.lane.b32.xlu0 %v3401_v4, %s2552_s20 }
 0x416   : > { %1660 = vrot.lane.b32.xlu1 %v3402_v5, %s2552_s20 }
 0x417   : > { %v1645_v44 = vpop.permute.xlu0 %1644 }
 0x418   : > { %v3126_v38 = vpop.permute.xlu1 %1648 }
 0x419   : > { %1662 = vrot.lane.b32.xlu0 %v3110_v37, %s2552_s20 }
 0x41a   : > { %1518 = vrot.lane.b32.xlu1 %v3401_v4, %s2553_s25 }
 0x41b   : > { %v1647_v19 = vpop.permute.xlu0 %1646 }
 0x41c   : > { %v1507_v7 = vpop.permute.xlu1 %1506  ;;  %v1665_v21 = vsel %vm1664_vm13, %v1645_v44, %v1647_v19  ;;  %v1666_v22 = vsel %vm1664_vm13, %v1647_v19, %v3126_v38  ;;  %v3225_v19 = vld [vmem:[%s3369_s5] sm:$0x3] }
 0x41d   : > { %1520 = vrot.lane.b32.xlu0 %v3402_v5, %s2553_s25  ;;  %v1826_v23 = vpack.c.bf16 %v1666_v22, %v1666_v22  ;;  %v1825_v24 = vpack.c.bf16 %v1665_v21, %v1665_v21 }
 0x41e   : > { %1588 = vrot.lane.b32.xlu1 %v3401_v4, %s2554_s26 }
 0x41f   : > { %v3139_v26 = vpop.permute.xlu0 %1508  ;;  %2250 = vmatprep.subr.msk.bf16.mxu1 %vm904_vm11, %v1826_v23  ;;  %v1845_v27 = vsel %vm904_vm11, %v1825_v24, 0 }
 0x420   : > { %v1577_v25 = vpop.permute.xlu1 %1576  ;;  %v1526_v28 = vsel %vm1524_vm15, %v1507_v7, %v3139_v26  ;;  %1881 = vmatpush1.bf16.msra.mxu1 %v1845_v27 }
 0x421   : > { %1590 = vrot.lane.b32.xlu0 %v3402_v5, %s2554_s26 }
 0x422   : > { %1522 = vrot.lane.b32.xlu1 %v3110_v37, %s2553_s25 }
 0x423   : > { %v3149_v29 = vpop.permute.xlu0 %1578 }
 0x424   : > { %v1505_v30 = vpop.permute.xlu1 %1504  ;;  %v1596_v36 = vsel %vm1594_vm1, %v1577_v25, %v3149_v29 }
 0x425   : > { %v1525_v39 = vsel %vm1524_vm15, %v1505_v30, %v1507_v7  ;;  %1592 = vrot.lane.b32.xlu0 %v3110_v37, %s2554_s26  ;;  %v1816_v31 = vpack.c.bf16 %v1596_v36, %v1526_v28 }
 0x426   : > { %1379 = vrot.lane.b32.xlu1 %v3401_v4, %s2544_s23 }
 0x427   : > { %v1575_v32 = vpop.permute.xlu0 %1574  ;;  %1882 = vmatprep.subr.bf16.mxu1 %v1816_v31 }
 0x428   : > { %v1368_v51 = vpop.permute.xlu1 %1367  ;;  %v1595_v52 = vsel %vm1594_vm1, %v1575_v32, %v1577_v25 }
 0x429   : > { %1381 = vrot.lane.b32.xlu0 %v3402_v5, %s2544_s23  ;;  %v1815_v53 = vpack.c.bf16 %v1595_v52, %v1525_v39 }
 0x42a   : > { %1448 = vrot.lane.b32.xlu1 %v3401_v4, %s2555_s28 }
 0x42b   : > { %v3163_v54 = vpop.permute.xlu0 %1369  ;;  %1883 = vmatpush1.bf16.msra.mxu1 %v1815_v53 }
 0x42c   : > { %v1437_v55 = vpop.permute.xlu1 %1436  ;;  %v1386_v56 = vsel %vm858_vm8, %v1368_v51, %v3163_v54 }
 0x42d   : > { %1450 = vrot.lane.b32.xlu0 %v3402_v5, %s2555_s28 }
 0x42e   : > { %1383 = vrot.lane.b32.xlu1 %v3110_v37, %s2544_s23 }
 0x42f   : > { %v3171_v57 = vpop.permute.xlu0 %1438 }
 0x430   : > { %v1366_v58 = vpop.permute.xlu1 %1365  ;;  %v1456_v59 = vsel %vm1454_vm2, %v1437_v55, %v3171_v57 }
 0x431   : > { %v1385_v60 = vsel %vm858_vm8, %v1366_v58, %v1368_v51  ;;  %1452 = vrot.lane.b32.xlu0 %v3110_v37, %s2555_s28  ;;  %v1806_v62 = vpack.c.bf16 %v1456_v59, %v1386_v56 }
 0x432   : > { %1241 = vrot.lane.b32.xlu1 %v3401_v4, %s2548_s27 }
 0x433   : > { %v1435_v9 = vpop.permute.xlu0 %1434  ;;  %1884 = vmatprep.subr.bf16.mxu1 %v1806_v62 }
 0x434   : > { %v1230_v6 = vpop.permute.xlu1 %1229  ;;  %v1455_v10 = vsel %vm1454_vm2, %v1435_v9, %v1437_v55 }
 0x435   : > { %1243 = vrot.lane.b32.xlu0 %v3402_v5, %s2548_s27  ;;  %v1805_v11 = vpack.c.bf16 %v1455_v10, %v1385_v60 }
 0x436   : > { %1310 = vrot.lane.b32.xlu1 %v3401_v4, %s2545_s24 }
 0x437   : > { %v3187_v12 = vpop.permute.xlu0 %1231  ;;  %1885 = vmatpush1.bf16.msra.mxu1 %v1805_v11 }
 0x438   : > { %v1299_v13 = vpop.permute.xlu1 %1298  ;;  %v1248_v14 = vsel %vm744_vm14, %v1230_v6, %v3187_v12 }
 0x439   : > { %1312 = vrot.lane.b32.xlu0 %v3402_v5, %s2545_s24 }
 0x43a   : > { %1245 = vrot.lane.b32.xlu1 %v3110_v37, %s2548_s27 }
 0x43b   : > { %v3195_v15 = vpop.permute.xlu0 %1300 }
 0x43c   : > { %v1228_v16 = vpop.permute.xlu1 %1227  ;;  %v1317_v17 = vsel %vm839_vm10, %v1299_v13, %v3195_v15 }
 0x43d   : > { %v1247_v18 = vsel %vm744_vm14, %v1228_v16, %v1230_v6  ;;  %1314 = vrot.lane.b32.xlu0 %v3110_v37, %s2545_s24  ;;  %v1796_v20 = vpack.c.bf16 %v1317_v17, %v1248_v14 }
 0x43e   : > { %1172 = vrot.lane.b32.xlu1 %v3401_v4, %s2550_s30 }
 0x43f   : > { %v1297_v33 = vpop.permute.xlu0 %1296  ;;  %1886 = vmatprep.subr.bf16.mxu1 %v1796_v20 }
 0x440   : > { %v1161_v34 = vpop.permute.xlu1 %1160  ;;  %v1316_v35 = vsel %vm839_vm10, %v1297_v33, %v1299_v13 }
 0x441   : > { %1174 = vrot.lane.b32.xlu0 %v3402_v5, %s2550_s30  ;;  %v1795_v40 = vpack.c.bf16 %v1316_v35, %v1247_v18 }
 0x442   : > { %1176 = vrot.lane.b32.xlu1 %v3110_v37, %s2550_s30 }
 0x443   : > { %v3212_v42 = vpop.permute.xlu0 %1162  ;;  %1887 = vmatpush1.bf16.msra.mxu1 %v1795_v40 }
 0x444   : > { %v1159_v43 = vpop.permute.xlu1 %1158  ;;  %v1179_v45 = vsel %vm717_vm7, %v1161_v34, %v3212_v42 }
 0x445   : > { %v1178_v46 = vsel %vm717_vm7, %v1159_v43, %v1161_v34  ;;  %v1786_v47 = vpack.c.bf16 %v1179_v45, %v3395_v49  ;;  %1838 = vperm.xlu0 %2413, %v1835_v41  }
 0x446   : > { %v1785_v3 = vpack.c.bf16 %v1178_v46, %v3394_v48 }
 0x447   : > { %v1651_v8 = vpop.permute.xlu0 %1650  ;;  %1888 = vmatprep.subr.bf16.mxu1 %v1786_v47 }
 0x448   : > { %v1653_v37 = vpop.permute.xlu1 %1652  ;;  %v1667_v44 = vsel %vm1664_vm13, %v3126_v38, %v1651_v8  ;;  %1889 = vmatpush1.bf16.msra.mxu1 %v1785_v3 }
 0x449   : > { %v1668_v7 = vsel %vm1664_vm13, %v1651_v8, %v1653_v37  ;;  %v1827_v22 = vpack.c.bf16 %v1667_v44, %v1667_v44 }
 0x44a   : > { %v1828_v21 = vpack.c.bf16 %v1668_v7, %v1668_v7 }
 0x44b   : > { %v1655_v49 = vpop.permute.xlu0 %1654  ;;  %v1851_v48 = vsel %vm904_vm11, %v1827_v22, 0  ;;  %2251 = vmatmul.mubr.msk.bf16.vlgmr.msra.gmra.mxu1 %vm900_vm0, %v3225_v19 }
 0x44c   : > { %v3227_v23 = vpop.permute.xlu1 %1656  ;;  %2252 = vmatprep.subr.msk.bf16.mxu0 %vm904_vm11, %v1828_v21  ;;  %v1669_v38 = vsel %vm1664_vm13, %v1653_v37, %v1655_v49  ;;  %1988 = vmatprep.mubr.bf16.mxu1 %v2542_v2 }
 0x44d   : > { %v1670_v24 = vsel %vm1664_vm13, %v1655_v49, %v3227_v23  ;;  %1922 = vmatpush1.bf16.msra.mxu0 %v1851_v48  ;;  %v1829_v27 = vpack.c.bf16 %v1669_v38, %v1669_v38 }
 0x44e   : > { %v1830_v25 = vpack.c.bf16 %v1670_v24, %v1670_v24 }
 0x44f   : > { %v1511_v28 = vpop.permute.xlu0 %1510  ;;  %v1857_v36 = vsel %vm904_vm11, %v1829_v27, 0 }
 0x450   : > { %v1513_v30 = vpop.permute.xlu1 %1512  ;;  %2254 = vmatprep.subr.msk.bf16.mxu1 %vm904_vm11, %v1830_v25  ;;  %v1527_v39 = vsel %vm1524_vm15, %v3139_v26, %v1511_v28 }
 0x451   : > { %v1528_v31 = vsel %vm1524_vm15, %v1511_v28, %v1513_v30  ;;  %1963 = vmatpush1.bf16.msra.mxu1 %v1857_v36 }
 0x453   : > { %v1515_v32 = vpop.permute.xlu0 %1514 }
 0x454   : > { %v3242_v51 = vpop.permute.xlu1 %1516  ;;  %v1529_v52 = vsel %vm1524_vm15, %v1513_v30, %v1515_v32 }
 0x455   : > { %v1530_v53 = vsel %vm1524_vm15, %v1515_v32, %v3242_v51 }
 0x457   : > { %v1581_v55 = vpop.permute.xlu0 %1580 }
 0x458   : > { %v1583_v56 = vpop.permute.xlu1 %1582  ;;  %v1597_v58 = vsel %vm1594_vm1, %v3149_v29, %v1581_v55 }
 0x459   : > { %v1598_v59 = vsel %vm1594_vm1, %v1581_v55, %v1583_v56  ;;  %v1817_v26 = vpack.c.bf16 %v1597_v58, %v1527_v39 }
 0x45a   : > { %v1818_v60 = vpack.c.bf16 %v1598_v59, %v1528_v31 }
 0x45b   : > { %v1585_v62 = vpop.permute.xlu0 %1584 }
 0x45c   : > { %v3250_v9 = vpop.permute.xlu1 %1586  ;;  %1923 = vmatprep.subr.bf16.mxu0 %v1818_v60  ;;  %v1599_v6 = vsel %vm1594_vm1, %v1583_v56, %v1585_v62 }
 0x45d   : > { %v1600_v10 = vsel %vm1594_vm1, %v1585_v62, %v3250_v9  ;;  %1924 = vmatpush1.bf16.msra.mxu0 %v1817_v26  ;;  %v1819_v13 = vpack.c.bf16 %v1599_v6, %v1529_v52 }
 0x45e   : > { %v1820_v11 = vpack.c.bf16 %v1600_v10, %v1530_v53 }
 0x45f   : > { %v1372_v14 = vpop.permute.xlu0 %1371 }
 0x460   : > { %v1374_v16 = vpop.permute.xlu1 %1373  ;;  %1964 = vmatprep.subr.bf16.mxu1 %v1820_v11  ;;  %v1387_v29 = vsel %vm858_vm8, %v3163_v54, %v1372_v14 }
 0x461   : > { %v1388_v17 = vsel %vm858_vm8, %v1372_v14, %v1374_v16  ;;  %1965 = vmatpush1.bf16.msra.mxu1 %v1819_v13 }
 0x463   : > { %v1376_v18 = vpop.permute.xlu0 %1375 }
 0x464   : > { %v3258_v20 = vpop.permute.xlu1 %1377  ;;  %v1389_v33 = vsel %vm858_vm8, %v1374_v16, %v1376_v18 }
 0x465   : > { %v1390_v34 = vsel %vm858_vm8, %v1376_v18, %v3258_v20 }
 0x467   : > { %v1441_v35 = vpop.permute.xlu0 %1440 }
 0x468   : > { %v1443_v40 = vpop.permute.xlu1 %1442  ;;  %v1457_v41 = vsel %vm1454_vm2, %v3171_v57, %v1441_v35 }
 0x469   : > { %v1458_v43 = vsel %vm1454_vm2, %v1441_v35, %v1443_v40  ;;  %v1807_v54 = vpack.c.bf16 %v1457_v41, %v1387_v29 }
 0x46a   : > { %v1808_v45 = vpack.c.bf16 %v1458_v43, %v1388_v17 }
 0x46b   : > { %v1445_v46 = vpop.permute.xlu0 %1444 }
 0x46c   : > { %v3266_v47 = vpop.permute.xlu1 %1446  ;;  %1925 = vmatprep.subr.bf16.mxu0 %v1808_v45  ;;  %v1459_v3 = vsel %vm1454_vm2, %v1443_v40, %v1445_v46 }
 0x46d   : > { %v1460_v8 = vsel %vm1454_vm2, %v1445_v46, %v3266_v47  ;;  %1926 = vmatpush1.bf16.msra.mxu0 %v1807_v54  ;;  %v1809_v44 = vpack.c.bf16 %v1459_v3, %v1389_v33 }
 0x46e   : > { %v1810_v37 = vpack.c.bf16 %v1460_v8, %v1390_v34 }
 0x46f   : > { %v1234_v7 = vpop.permute.xlu0 %1233 }
 0x470   : > { %v1236_v21 = vpop.permute.xlu1 %1235  ;;  %1966 = vmatprep.subr.bf16.mxu1 %v1810_v37  ;;  %v1249_v57 = vsel %vm744_vm14, %v3187_v12, %v1234_v7 }
 0x471   : > { %v1250_v22 = vsel %vm744_vm14, %v1234_v7, %v1236_v21  ;;  %1967 = vmatpush1.bf16.msra.mxu1 %v1809_v44 }
 0x473   : > { %v1238_v49 = vpop.permute.xlu0 %1237 }
 0x474   : > { %v3274_v48 = vpop.permute.xlu1 %1239  ;;  %v1251_v38 = vsel %vm744_vm14, %v1236_v21, %v1238_v49 }
 0x475   : > { %v1252_v24 = vsel %vm744_vm14, %v1238_v49, %v3274_v48 }
 0x477   : > { %v1303_v25 = vpop.permute.xlu0 %1302 }
 0x478   : > { %v1305_v27 = vpop.permute.xlu1 %1304  ;;  %v1318_v28 = vsel %vm839_vm10, %v3195_v15, %v1303_v25 }
 0x479   : > { %v1319_v30 = vsel %vm839_vm10, %v1303_v25, %v1305_v27  ;;  %v1797_v12 = vpack.c.bf16 %v1318_v28, %v1249_v57 }
 0x47a   : > { %v1798_v36 = vpack.c.bf16 %v1319_v30, %v1250_v22 }
 0x47b   : > { %v1307_v39 = vpop.permute.xlu0 %1306 }
 0x47c   : > { %v3282_v31 = vpop.permute.xlu1 %1308  ;;  %1927 = vmatprep.subr.bf16.mxu0 %v1798_v36  ;;  %v1320_v32 = vsel %vm839_vm10, %v1305_v27, %v1307_v39 }
 0x47d   : > { %v1321_v52 = vsel %vm839_vm10, %v1307_v39, %v3282_v31  ;;  %1928 = vmatpush1.bf16.msra.mxu0 %v1797_v12  ;;  %v1799_v55 = vpack.c.bf16 %v1320_v32, %v1251_v38 }
 0x47e   : > { %v1800_v53 = vpack.c.bf16 %v1321_v52, %v1252_v24 }
 0x47f   : > { %v1165_v56 = vpop.permute.xlu0 %1164 }
 0x480   : > { %v1167_v58 = vpop.permute.xlu1 %1166  ;;  %1968 = vmatprep.subr.bf16.mxu1 %v1800_v53  ;;  %v1180_v15 = vsel %vm717_vm7, %v3212_v42, %v1165_v56 }
 0x481   : > { %v1181_v59 = vsel %vm717_vm7, %v1165_v56, %v1167_v58  ;;  %1969 = vmatpush1.bf16.msra.mxu1 %v1799_v55  ;;  %v1787_v26 = vpack.c.bf16 %v1180_v15, %v3396_v50 }
 0x482   : > { %v1788_v60 = vpack.c.bf16 %v1181_v59, %v3397_v63 }
 0x483   : > { %v1169_v62 = vpop.permute.xlu0 %1168 }
 0x484   : > { %v3292_v6 = vpop.permute.xlu1 %1170  ;;  %1929 = vmatprep.subr.bf16.mxu0 %v1788_v60  ;;  %v1182_v10 = vsel %vm717_vm7, %v1167_v58, %v1169_v62 }
 0x485   : > { %v1183_v11 = vsel %vm717_vm7, %v1169_v62, %v3292_v6  ;;  %1930 = vmatpush1.bf16.msra.mxu0 %v1787_v26  ;;  %v1789_v42 = vpack.c.bf16 %v1182_v10, %v3398_v0 }
 0x486   : > { %v1790_v13 = vpack.c.bf16 %v1183_v11, %v3399_v1 }
 0x487   : > { %v1659_v14 = vpop.permute.xlu0 %1658 }
 0x488   : > { %v1661_v16 = vpop.permute.xlu1 %1660  ;;  %1970 = vmatprep.subr.bf16.mxu1 %v1790_v13  ;;  %2253 = vmatmul.mubr.msk.bf16.vlgmr.msra.gmra.mxu0 %vm900_vm0, %v3225_v19  ;;  %v1671_v50 = vsel %vm1664_vm13, %v3227_v23, %v1659_v14 }
 0x489   : > { %v1672_v63 = vsel %vm1664_vm13, %v1659_v14, %v1661_v16  ;;  %1971 = vmatpush1.bf16.msra.mxu1 %v1789_v42  ;;  %2029 = vmatprep.mubr.bf16.mxu0 %v2542_v2  ;;  %v1831_v17 = vpack.c.bf16 %v1671_v50, %v1671_v50 }
 0x48a   : > { %v1832_v29 = vpack.c.bf16 %v1672_v63, %v1672_v63 }
 0x48b   : > { %v1663_v18 = vpop.permute.xlu0 %1662  ;;  %v1863_v0 = vsel %vm904_vm11, %v1831_v17, 0 }
 0x48c   : > { %v1519_v1 = vpop.permute.xlu1 %1518  ;;  %2256 = vmatprep.subr.msk.bf16.mxu0 %vm904_vm11, %v1832_v29  ;;  %2255 = vmatmul.mubr.msk.bf16.vlgmr.msra.gmra.mxu1 %vm900_vm0, %v3225_v19  ;;  %v1673_v33 = vsel %vm1664_vm13, %v1661_v16, %v1663_v18  ;;  %1693 = vst.msk [vmem:[#allocation5 + $0x2c8] sm:$0xff] %vm1136_vm12, %v1663_v18 }
 0x48d   : > { %v1531_v23 = vsel %vm1524_vm15, %v3242_v51, %v1519_v1  ;;  %2004 = vmatpush1.bf16.msra.mxu0 %v1863_v0  ;;  %2070 = vmatprep.mubr.bf16.mxu1 %v2542_v2  ;;  %v1833_v43 = vpack.c.bf16 %v1673_v33, %v1673_v33 }
 0x48f   : > { %v1521_v34 = vpop.permute.xlu0 %1520  ;;  %v1869_v2 = vsel %vm904_vm11, %v1833_v43, 0 }
 0x490   : > { %v1589_v35 = vpop.permute.xlu1 %1588  ;;  %v1532_v40 = vsel %vm1524_vm15, %v1519_v1, %v1521_v34 }
 0x491   : > { %v1601_v41 = vsel %vm1594_vm1, %v3250_v9, %v1589_v35 }
 0x492   : > { %v1821_v44 = vpack.c.bf16 %v1601_v41, %v1531_v23 }
 0x493   : > { %v1591_v45 = vpop.permute.xlu0 %1590  ;;  %v1784_v46 = vld [vmem:[#allocation5 + $0x2c8] sm:$0xff] }
 0x494   : > { %v1523_v54 = vpop.permute.xlu1 %1522  ;;  %v1602_v3 = vsel %vm1594_vm1, %v1589_v35, %v1591_v45  ;;  %v1834_v51 = vpack.c.bf16 %v1784_v46, %v1784_v46 }
 0x495   : > { %v1533_v8 = vsel %vm1524_vm15, %v1521_v34, %v1523_v54  ;;  %1553 = vst.msk [vmem:[#allocation5 + $0x228] sm:$0xff] %vm1136_vm12, %v1523_v54  ;;  %v1822_v37 = vpack.c.bf16 %v1602_v3, %v1532_v40 }
 0x496   : > { %2258 = vmatprep.subr.msk.bf16.mxu1 %vm904_vm11, %v1834_v51 }
 0x497   : > { %v1593_v7 = vpop.permute.xlu0 %1592  ;;  %2045 = vmatpush1.bf16.msra.mxu1 %v1869_v2  ;;  %2005 = vmatprep.subr.bf16.mxu0 %v1822_v37 }
 0x498   : > { %v1380_v21 = vpop.permute.xlu1 %1379  ;;  %v1603_v9 = vsel %vm1594_vm1, %v1591_v45, %v1593_v7  ;;  %1623 = vst.msk [vmem:[#allocation5 + $0x278] sm:$0xff] %vm1136_vm12, %v1593_v7  ;;  %2006 = vmatpush1.bf16.msra.mxu0 %v1821_v44 }
 0x499   : > { %v1391_v57 = vsel %vm858_vm8, %v3258_v20, %v1380_v21  ;;  %v1823_v20 = vpack.c.bf16 %v1603_v9, %v1533_v8 }
 0x49b   : > { %v1382_v22 = vpop.permute.xlu0 %1381 }
 0x49c   : > { %v1449_v49 = vpop.permute.xlu1 %1448  ;;  %v1392_v38 = vsel %vm858_vm8, %v1380_v21, %v1382_v22  ;;  %v1764_v28 = vld [vmem:[#allocation5 + $0x228] sm:$0xff] }
 0x49d   : > { %v1461_v24 = vsel %vm1454_vm2, %v3266_v47, %v1449_v49 }
 0x49e   : > { %v1811_v52 = vpack.c.bf16 %v1461_v24, %v1391_v57 }
 0x49f   : > { %v1451_v25 = vpop.permute.xlu0 %1450  ;;  %v1774_v30 = vld [vmem:[#allocation5 + $0x278] sm:$0xff] }
 0x4a0   : > { %v1384_v27 = vpop.permute.xlu1 %1383  ;;  %v1462_v36 = vsel %vm1454_vm2, %v1449_v49, %v1451_v25  ;;  %v1824_v39 = vpack.c.bf16 %v1774_v30, %v1764_v28 }
 0x4a1   : > { %v1393_v12 = vsel %vm858_vm8, %v1382_v22, %v1384_v27  ;;  %1413 = vst.msk [vmem:[#allocation5 + $0x188] sm:$0xff] %vm1136_vm12, %v1384_v27  ;;  %v1812_v32 = vpack.c.bf16 %v1462_v36, %v1392_v38  ;;  %vm2104_vm8 = vcmask 22532  }
 0x4a2   : > { %2046 = vmatprep.subr.bf16.mxu1 %v1824_v39 }
 0x4a3   : > { %v1453_v53 = vpop.permute.xlu0 %1452  ;;  %2047 = vmatpush1.bf16.msra.mxu1 %v1823_v20  ;;  %2007 = vmatprep.subr.bf16.mxu0 %v1812_v32 }
 0x4a4   : > { %v1242_v55 = vpop.permute.xlu1 %1241  ;;  %v1463_v47 = vsel %vm1454_vm2, %v1451_v25, %v1453_v53  ;;  %1483 = vst.msk [vmem:[#allocation5 + $0x1d8] sm:$0xff] %vm1136_vm12, %v1453_v53  ;;  %2008 = vmatpush1.bf16.msra.mxu0 %v1811_v52 }
 0x4a5   : > { %v1253_v56 = vsel %vm744_vm14, %v3274_v48, %v1242_v55  ;;  %v1813_v48 = vpack.c.bf16 %v1463_v47, %v1393_v12 }
 0x4a7   : > { %v1244_v58 = vpop.permute.xlu0 %1243 }
 0x4a8   : > { %v1311_v15 = vpop.permute.xlu1 %1310  ;;  %v1254_v59 = vsel %vm744_vm14, %v1242_v55, %v1244_v58  ;;  %v1744_v10 = vld [vmem:[#allocation5 + $0x188] sm:$0xff] }
 0x4a9   : > { %v1322_v60 = vsel %vm839_vm10, %v3282_v31, %v1311_v15 }
 0x4aa   : > { %v1801_v50 = vpack.c.bf16 %v1322_v60, %v1253_v56 }
 0x4ab   : > { %v1313_v26 = vpop.permute.xlu0 %1312  ;;  %v1754_v11 = vld [vmem:[#allocation5 + $0x1d8] sm:$0xff] }
 0x4ac   : > { %v1246_v62 = vpop.permute.xlu1 %1245  ;;  %v1323_v13 = vsel %vm839_vm10, %v1311_v15, %v1313_v26  ;;  %v1814_v14 = vpack.c.bf16 %v1754_v11, %v1744_v10 }
 0x4ad   : > { %v1255_v42 = vsel %vm744_vm14, %v1244_v58, %v1246_v62  ;;  %1275 = vst.msk [vmem:[#allocation5 + $0xe8] sm:$0xff] %vm1136_vm12, %v1246_v62  ;;  %v1802_v16 = vpack.c.bf16 %v1323_v13, %v1254_v59 }
 0x4ae   : > { %2048 = vmatprep.subr.bf16.mxu1 %v1814_v14 }
 0x4af   : > { %v1315_v63 = vpop.permute.xlu0 %1314  ;;  %2049 = vmatpush1.bf16.msra.mxu1 %v1813_v48  ;;  %2009 = vmatprep.subr.bf16.mxu0 %v1802_v16 }
 0x4b0   : > { %v1173_v29 = vpop.permute.xlu1 %1172  ;;  %v1324_v31 = vsel %vm839_vm10, %v1313_v26, %v1315_v63  ;;  %1344 = vst.msk [vmem:[#allocation5 + $0x138] sm:$0xff] %vm1136_vm12, %v1315_v63  ;;  %2010 = vmatpush1.bf16.msra.mxu0 %v1801_v50 }
 0x4b1   : > { %v1184_v17 = vsel %vm717_vm7, %v3292_v6, %v1173_v29  ;;  %v1803_v43 = vpack.c.bf16 %v1324_v31, %v1255_v42  ;;  %v1704_v6 = vld [vmem:[#allocation5 + $0x48] sm:$0xff] }
 0x4b2   : > { %v1791_v34 = vpack.c.bf16 %v1184_v17, %v3176_v61 }
 0x4b3   : > { %v1175_v18 = vpop.permute.xlu0 %1174 }
 0x4b4   : > { %v1177_v1 = vpop.permute.xlu1 %1176  ;;  %v1185_v0 = vsel %vm717_vm7, %v1173_v29, %v1175_v18  ;;  %v1724_v35 = vld [vmem:[#allocation5 + $0xe8] sm:$0xff] }
 0x4b5   : > { %v1186_v33 = vsel %vm717_vm7, %v1175_v18, %v1177_v1  ;;  %1206 = vst.msk [vmem:[#allocation5 + $0x98] sm:$0xff] %vm1136_vm12, %v1177_v1  ;;  %v1792_v23 = vpack.c.bf16 %v1185_v0, %v3401_v4  ;;  %vm2103_vm7 = vcmask 1042432  }
 0x4b6   : > { %v1793_v46 = vpack.c.bf16 %v1186_v33, %v3402_v5  ;;  %vm2105_vm10 = vmor %vm2104_vm8, %vm2103_vm7 }
 0x4b7   : > { %v1734_v40 = vld [vmem:[#allocation5 + $0x138] sm:$0xff]  ;;  %2011 = vmatprep.subr.bf16.mxu0 %v1792_v23 }
 0x4b8   : > { %v1804_v41 = vpack.c.bf16 %v1734_v40, %v1724_v35  ;;  %2012 = vmatpush1.bf16.msra.mxu0 %v1791_v34 }
 0x4ba   : > { %2050 = vmatprep.subr.bf16.mxu1 %v1804_v41 }
 0x4bb   : > { %2051 = vmatpush1.bf16.msra.mxu1 %v1803_v43  ;;  %2257 = vmatmul.mubr.msk.bf16.vlgmr.msra.gmra.mxu0 %vm900_vm0, %v3225_v19 }
 0x4bc   : > { %v1714_v45 = vld [vmem:[#allocation5 + $0x98] sm:$0xff] }
 0x4bd   : > { %v1794_v54 = vpack.c.bf16 %v1714_v45, %v1704_v6 }
 0x4bf   : > { %2052 = vmatprep.subr.bf16.mxu1 %v1794_v54 }
 0x4c0   : > { %2053 = vmatpush1.bf16.msra.mxu1 %v1793_v46  ;;  %v1839_v4 = vpop.permute.xlu0 %1838 }
 0x4c3   : > { %2259 = vmatmul.mubr.msk.bf16.vlgmr.msra.gmra.mxu1 %vm900_vm0, %v3225_v19 }
 0x50b   : > { %v1908_v61 = vpop.f32.mrf.mxu1 }
 0x50c   : > { %v1909_v3 = vadd.f32 %v1908_v61, %v1839_v4 }
 0x50d   : > { %v1910_v8 = vpop.f32.mrf.mxu1 }
 0x50e   : > { %v1911_v51 = vadd.f32 %v1910_v8, %v1839_v4 }
 0x50f   : > { %v1912_v37 = vpop.f32.mrf.mxu1 }
 0x510   : > { %v2089_v2 = vcombine.low %v1909_v3, %v1911_v51 }
 0x511   : > { %v1913_v44 = vpop.f32.mrf.mxu1 }
 0x512   : > { %2099 = vst [vmem:[%s2690_s17] sm:$0x77] %v2089_v2 }
 0x548   : > { %v1949_v7 = vpop.f32.mrf.mxu0 }
 0x549   : > { %v1950_v21 = vadd.f32 %v1949_v7, %v1839_v4 }
 0x54a   : > { %v1951_v9 = vpop.f32.mrf.mxu0 }
 0x54b   : > { %v1952_v5 = vadd.f32 %v1951_v9, %v1839_v4 }
 0x54c   : > { %v1990_v57 = vpop.f32.mrf.mxu1  ;;  %v1953_v22 = vpop.f32.mrf.mxu0 }
 0x54d   : > { %v1991_v49 = vadd.f32 %v1990_v57, %v1839_v4  ;;  %v2090_v38 = vcombine.low %v1950_v21, %v1952_v5 }
 0x54e   : > { %v1992_v19 = vpop.f32.mrf.mxu1  ;;  %v1954_v24 = vpop.f32.mrf.mxu0 }
 0x54f   : > { %2100 = vst [vmem:[%s2690_s17 + $0x8] sm:$0x77] %v2090_v38  ;;  %v1993_v25 = vadd.f32 %v1992_v19, %v1839_v4 }
 0x550   : > { %v1994_v27 = vpop.f32.mrf.mxu1 }
 0x551   : > { %v2091_v28 = vcombine.low %v1991_v49, %v1993_v25 }
 0x552   : > { %v1995_v30 = vpop.f32.mrf.mxu1 }
 0x553   : > { %2101 = vst [vmem:[%s2690_s17 + $0x10] sm:$0x77] %v2091_v28 }
 0x57b   : > { %v2031_v36 = vpop.f32.mrf.mxu0 }
 0x57c   : > { %v2032_v12 = vadd.f32 %v2031_v36, %v1839_v4 }
 0x57d   : > { %v2033_v39 = vpop.f32.mrf.mxu0 }
 0x57e   : > { %v2034_v20 = vadd.f32 %v2033_v39, %v1839_v4 }
 0x57f   : > { %v2035_v32 = vpop.f32.mrf.mxu0 }
 0x580   : > { %v2092_v52 = vcombine.low %v2032_v12, %v2034_v20 }
 0x581   : > { %v2036_v53 = vpop.f32.mrf.mxu0 }
 0x582   : > { %2102 = vst [vmem:[%s2690_s17 + $0x18] sm:$0x77] %v2092_v52 }
 0x583   : > { %v2072_v55 = vpop.f32.mrf.mxu1 }
 0x584   : > { %v2073_v56 = vadd.f32 %v2072_v55, %v1839_v4 }
 0x585   : > { %v2074_v47 = vpop.f32.mrf.mxu1 }
 0x586   : > { %v2075_v58 = vadd.f32 %v2074_v47, %v1839_v4 }
 0x587   : > { %v2076_v15 = vpop.f32.mrf.mxu1 }
 0x588   : > { %v2093_v59 = vcombine.low %v2073_v56, %v2075_v58 }
 0x589   : > { %v2077_v60 = vpop.f32.mrf.mxu1 }
 0x58a   : > { %2106 = vst.msk [vmem:[%s2690_s17 + $0x20] sm:$0x77] %vm2105_vm10, %v2093_v59 }
 0x58b PF: > { %s26_s21 = sadd.s32 1, %s2480_s21  }
 0x58c   : > { %p23_p6 = scmp.ge.s32.totalorder %s26_s21, 4  }
 0x58e   :  { %25 = sbr.rel (!%p23_p6) target bundleno = 3 (0x3), region = 156 }

</bundles_post_ra>
